<compile_context>
chip_gen: v7x
topology: tpu7x:2x2x1
jax: 0.10.0
libtpu: 0.0.40
codegen_flags: <defaults>
</compile_context>

<pallas_src>
import functools
import math

import jax
import jax.numpy as jnp
from jax import lax
from jax.experimental import pallas as pl
from jax.experimental.pallas import tpu as pltpu


def _flash_attn_kernel(q_ref, k_ref, v_ref, o_ref, m_sc, l_sc, acc_sc, *, q_scale):
    """One (batch, q-tile, kv-tile) grid step of online-softmax attention."""
    kv = pl.program_id(2)

    @pl.when(kv == 0)
    def _init():
        m_sc[...] = jnp.full(m_sc.shape, -jnp.inf, dtype=m_sc.dtype)
        l_sc[...] = jnp.zeros(l_sc.shape, dtype=l_sc.dtype)
        acc_sc[...] = jnp.zeros(acc_sc.shape, dtype=acc_sc.dtype)

    # Fold 1/inv_scale into q (tq*D elements) instead of scaling the (tq, tk) scores.
    # Python-float constant keeps q in its native dtype (bf16 stays bf16 for the MXU).
    q = q_ref[...] * q_scale                       # (tq, D)
    k = k_ref[...]                                 # (tk, D)

    # s = q @ k^T without an explicit transpose: contract the last dims directly.
    s = lax.dot_general(
        q, k,
        dimension_numbers=(((1,), (1,)), ((), ())),
        preferred_element_type=jnp.float32,
    )                                              # (tq, tk) f32

    m_prev = m_sc[...]                                              # (tq, 1)
    m_new = jnp.maximum(m_prev, jnp.max(s, axis=-1, keepdims=True))
    alpha = jnp.exp(m_prev - m_new)                                 # rescale old accum
    p = jnp.exp(s - m_new)                                          # (tq, tk)

    l_sc[...] = alpha * l_sc[...] + jnp.sum(p, axis=-1, keepdims=True)
    acc_sc[...] = alpha * acc_sc[...] + jnp.dot(
        p.astype(v_ref.dtype), v_ref[...], preferred_element_type=jnp.float32
    )
    m_sc[...] = m_new

    @pl.when(kv == pl.num_programs(2) - 1)
    def _finalize():
        # (tq, 1) reciprocal is tiny; exact keeps bit-level fidelity to the reference.
        o_ref[...] = (
            acc_sc[...] * pl.reciprocal(l_sc[...], approx=False)
        ).astype(o_ref.dtype)


def _pick_tile(dim, target):
    """Largest tile <= target that divides dim and keeps the sublane dim a multiple of 8.

    Falls back to the full dim (always a legal block) when no such divisor exists.
    """
    if dim <= target:
        return dim
    t = (target // 8) * 8
    while t >= 8:
        if dim % t == 0:
            return t
        t -= 8
    return dim


def sdpa_pallas(query, key, value, *, tq_target=128, tk_target=256):
    """query (B, Lq, D), key (B, Lk, D), value (B, Lk, Dv) -> (B, Lq, Dv)."""
    B, Lq, Dq = query.shape
    Bk, Lk, Dk = key.shape
    Bv, Lkv, Dv = value.shape
    assert B == Bk == Bv and Lk == Lkv and Dq == Dk

    # Reference formula; with D_q == D_k (required by the matmul) this is sqrt(D).
    inv_scale_factor = math.sqrt(float(Dq)) + math.sqrt(float(Dk - Dq))
    q_scale = 1.0 / inv_scale_factor

    tq = _pick_tile(Lq, tq_target)
    tk = _pick_tile(Lk, tk_target)
    grid = (B, Lq // tq, Lk // tk)

    kernel = functools.partial(_flash_attn_kernel, q_scale=q_scale)

    return pl.pallas_call(
        kernel,
        out_shape=jax.ShapeDtypeStruct((B, Lq, Dv), query.dtype),
        grid=grid,
        in_specs=[
            pl.BlockSpec((None, tq, Dq), lambda b, i, j: (b, i, 0)),
            pl.BlockSpec((None, tk, Dk), lambda b, i, j: (b, j, 0)),
            pl.BlockSpec((None, tk, Dv), lambda b, i, j: (b, j, 0)),
        ],
        out_specs=pl.BlockSpec((None, tq, Dv), lambda b, i, j: (b, i, 0)),
        scratch_shapes=[
            pltpu.VMEM((tq, 1), jnp.float32),    # running row max m
            pltpu.VMEM((tq, 1), jnp.float32),    # running row sum l
            pltpu.VMEM((tq, Dv), jnp.float32),   # f32 output accumulator
        ],
        compiler_params=pltpu.CompilerParams(
            dimension_semantics=("parallel", "parallel", "arbitrary"),
            vmem_limit_bytes=32 * 1024 * 1024,
        ),
    )(query, key, value)


class Model:
    """JAX mirror of the PyTorch Model (dropout_p must be 0)."""

    def __init__(self, query_dim, key_dim, value_dim, dropout_p=0, *, prng=None):
        assert dropout_p == 0  # TODO(synk): implement dropout via pltpu.prng_* if p > 0.
        if prng is None:
            prng = jax.random.PRNGKey(0)
        # Parameter exists in the reference module but is unused in forward().
        self.query_key_score = jax.random.uniform(
            prng, (query_dim, key_dim), minval=-0.001, maxval=0.001, dtype=jnp.float32
        )

    def forward(self, query, key, value):
        return sdpa_pallas(query, key, value)

    __call__ = forward


def _reference(query, key, value):
    d_q = query.shape[-1]
    d_k = key.shape[-1]
    inv_scale = math.sqrt(float(d_q)) + math.sqrt(float(d_k - d_q))
    qf = query.astype(jnp.float32)
    kf = key.astype(jnp.float32)
    vf = value.astype(jnp.float32)
    qk = jnp.einsum("bqd,bkd->bqk", qf, kf, precision=lax.Precision.HIGHEST) / inv_scale
    p = jax.nn.softmax(qk, axis=-1)
    out = jnp.einsum("bqk,bkd->bqd", p, vf, precision=lax.Precision.HIGHEST)
    return out.astype(query.dtype)


if __name__ == "__main__":
    root = jax.random.PRNGKey(0)
    k_q, k_k, k_v, k_p = jax.random.split(root, 4)

    # Modest shapes that exercise the full tiling path: grid = (B=2, Lq/tq=2, Lk/tk=2),
    # lane-dense Dv=128 output, (8,128)-aligned q/k tiles.
    B, Lq, Lk, D, Dv = 2, 256, 512, 64, 128
    query = jax.random.normal(k_q, (B, Lq, D), dtype=jnp.float32)
    key = jax.random.normal(k_k, (B, Lk, D), dtype=jnp.float32)
    value = jax.random.normal(k_v, (B, Lk, Dv), dtype=jnp.float32)

    model = Model(query_dim=1, key_dim=1, value_dim=1, dropout_p=0, prng=k_p)

    out = jax.block_until_ready(model(query, key, value))

    ref = _reference(query, key, value)
    assert out.shape == (B, Lq, Dv)
    assert out.dtype == query.dtype
    err = float(jnp.max(jnp.abs(out.astype(jnp.float32) - ref.astype(jnp.float32))))
    assert jnp.allclose(out, ref, atol=1e-4, rtol=1e-4), f"mismatch vs reference, max|d|={err}"

    print("KERNEL_OK")
</pallas_src>

<mosaic_0001>
module attributes {stable_mosaic.version = 11 : i64} {
  func.func @_flash_attn_kernel(%arg0: i32, %arg1: i32, %arg2: i32, %arg3: memref<1x128x64xf32, #tpu.memory_space<vmem>>, %arg4: memref<1x256x64xf32, #tpu.memory_space<vmem>>, %arg5: memref<1x256x128xf32, #tpu.memory_space<vmem>>, %arg6: memref<1x128x128xf32, #tpu.memory_space<vmem>>, %arg7: memref<128x1xf32, #tpu.memory_space<vmem>>, %arg8: memref<128x1xf32, #tpu.memory_space<vmem>>, %arg9: memref<128x128xf32, #tpu.memory_space<vmem>>) attributes {dimension_semantics = [#tpu.dimension_semantics<parallel>, #tpu.dimension_semantics<parallel>, #tpu.dimension_semantics<arbitrary>], iteration_bounds = array<i64: 2, 2, 2>, scalar_prefetch = 0 : i64, scratch_operands = 3 : i64, tpu.core_type = #tpu.core_type<tc>, window_params = [{transform_indices = @transform_0, window_bounds = array<i64: 1, 128, 64>}, {transform_indices = @transform_1, window_bounds = array<i64: 1, 256, 64>}, {transform_indices = @transform_2, window_bounds = array<i64: 1, 256, 128>}, {transform_indices = @transform_3, window_bounds = array<i64: 1, 128, 128>}]} {
    %c0_i32 = arith.constant 0 : i32
    %0 = arith.cmpi eq, %arg2, %c0_i32 : i32
    %1 = arith.extui %0 : i1 to i32
    %c0_i32_0 = arith.constant 0 : i32
    %2 = arith.cmpi ne, %1, %c0_i32_0 : i32
    scf.if %2 {
      %cst_26 = arith.constant 0xFF800000 : f32
      %37 = vector.broadcast %cst_26 : f32 to vector<128x1xf32>
      %c0_27 = arith.constant 0 : index
      %c0_28 = arith.constant 0 : index
      %38 = vector.load %arg7[%c0_27, %c0_28] : memref<128x1xf32, #tpu.memory_space<vmem>>, vector<128x1xf32>
      tpu.vector_store %arg7[%c0_27, %c0_28], %37 {strides = array<i32>} : memref<128x1xf32, #tpu.memory_space<vmem>>, vector<128x1xf32>,
      %cst_29 = arith.constant 0.000000e+00 : f32
      %39 = vector.broadcast %cst_29 : f32 to vector<128x1xf32>
      %c0_30 = arith.constant 0 : index
      %c0_31 = arith.constant 0 : index
      %40 = vector.load %arg8[%c0_30, %c0_31] : memref<128x1xf32, #tpu.memory_space<vmem>>, vector<128x1xf32>
      tpu.vector_store %arg8[%c0_30, %c0_31], %39 {strides = array<i32>} : memref<128x1xf32, #tpu.memory_space<vmem>>, vector<128x1xf32>,
      %cst_32 = arith.constant 0.000000e+00 : f32
      %41 = vector.broadcast %cst_32 : f32 to vector<128x128xf32>
      %c0_33 = arith.constant 0 : index
      %c0_34 = arith.constant 0 : index
      %42 = vector.load %arg9[%c0_33, %c0_34] : memref<128x128xf32, #tpu.memory_space<vmem>>, vector<128x128xf32>
      tpu.vector_store %arg9[%c0_33, %c0_34], %41 {strides = array<i32>} : memref<128x128xf32, #tpu.memory_space<vmem>>, vector<128x128xf32>,
    } else {
    }
    %c0 = arith.constant 0 : index
    %c0_1 = arith.constant 0 : index
    %c0_2 = arith.constant 0 : index
    %3 = vector.load %arg3[%c0, %c0_1, %c0_2] : memref<1x128x64xf32, #tpu.memory_space<vmem>>, vector<1x128x64xf32>
    %4 = vector.shape_cast %3 : vector<1x128x64xf32> to vector<128x64xf32>
    %cst = arith.constant 1.250000e-01 : f32
    %5 = vector.broadcast %cst : f32 to vector<128x64xf32>
    %6 = arith.mulf %4, %5 : vector<128x64xf32>
    %c0_3 = arith.constant 0 : index
    %c0_4 = arith.constant 0 : index
    %c0_5 = arith.constant 0 : index
    %7 = vector.load %arg4[%c0_3, %c0_4, %c0_5] : memref<1x256x64xf32, #tpu.memory_space<vmem>>, vector<1x256x64xf32>
    %8 = vector.shape_cast %7 : vector<1x256x64xf32> to vector<256x64xf32>
    %cst_6 = arith.constant dense<0.000000e+00> : vector<128x256xf32>
    %9 = tpu.matmul %6, %8, %cst_6 {dimension_numbers = #tpu.dot_dimension_numbers<[1], [1], [0], [0], [0, 0, 1, 0], [], []>} : vector<128x64xf32>, vector<256x64xf32>, vector<128x256xf32> -> vector<128x256xf32>
    %c0_7 = arith.constant 0 : index
    %c0_8 = arith.constant 0 : index
    %10 = vector.load %arg7[%c0_7, %c0_8] : memref<128x1xf32, #tpu.memory_space<vmem>>, vector<128x1xf32>
    %cst_9 = arith.constant dense<0xFF800000> : vector<128xf32>
    %11 = vector.multi_reduction <maximumf>, %9, %cst_9 [1] : vector<128x256xf32> to vector<128xf32>
    %12 = vector.shape_cast %11 : vector<128xf32> to vector<128x1xf32>
    %13 = arith.maximumf %10, %12 : vector<128x1xf32>
    %14 = arith.subf %10, %13 : vector<128x1xf32>
    %15 = math.exp %14 : vector<128x1xf32>
    %16 = vector.broadcast %13 : vector<128x1xf32> to vector<128x256xf32>
    %17 = arith.subf %9, %16 : vector<128x256xf32>
    %18 = math.exp %17 : vector<128x256xf32>
    %c0_10 = arith.constant 0 : index
    %c0_11 = arith.constant 0 : index
    %19 = vector.load %arg8[%c0_10, %c0_11] : memref<128x1xf32, #tpu.memory_space<vmem>>, vector<128x1xf32>
    %20 = arith.mulf %15, %19 : vector<128x1xf32>
    %cst_12 = arith.constant dense<0.000000e+00> : vector<128xf32>
    %21 = vector.multi_reduction <add>, %18, %cst_12 [1] : vector<128x256xf32> to vector<128xf32>
    %22 = vector.shape_cast %21 : vector<128xf32> to vector<128x1xf32>
    %23 = arith.addf %20, %22 : vector<128x1xf32>
    %c0_13 = arith.constant 0 : index
    %c0_14 = arith.constant 0 : index
    %24 = vector.load %arg8[%c0_13, %c0_14] : memref<128x1xf32, #tpu.memory_space<vmem>>, vector<128x1xf32>
    tpu.vector_store %arg8[%c0_13, %c0_14], %23 {strides = array<i32>} : memref<128x1xf32, #tpu.memory_space<vmem>>, vector<128x1xf32>,
    %c0_15 = arith.constant 0 : index
    %c0_16 = arith.constant 0 : index
    %25 = vector.load %arg9[%c0_15, %c0_16] : memref<128x128xf32, #tpu.memory_space<vmem>>, vector<128x128xf32>
    %26 = vector.broadcast %15 : vector<128x1xf32> to vector<128x128xf32>
    %27 = arith.mulf %26, %25 : vector<128x128xf32>
    %c0_17 = arith.constant 0 : index
    %c0_18 = arith.constant 0 : index
    %c0_19 = arith.constant 0 : index
    %28 = vector.load %arg5[%c0_17, %c0_18, %c0_19] : memref<1x256x128xf32, #tpu.memory_space<vmem>>, vector<1x256x128xf32>
    %29 = vector.shape_cast %28 : vector<1x256x128xf32> to vector<256x128xf32>
    %cst_20 = arith.constant dense<0.000000e+00> : vector<128x128xf32>
    %30 = tpu.matmul %18, %29, %cst_20 {dimension_numbers = #tpu.dot_dimension_numbers<[1], [0], [0], [1], [0, 0, 1, 1], [], []>} : vector<128x256xf32>, vector<256x128xf32>, vector<128x128xf32> -> vector<128x128xf32>
    %31 = arith.addf %27, %30 : vector<128x128xf32>
    %c0_21 = arith.constant 0 : index
    %c0_22 = arith.constant 0 : index
    %32 = vector.load %arg9[%c0_21, %c0_22] : memref<128x128xf32, #tpu.memory_space<vmem>>, vector<128x128xf32>
    tpu.vector_store %arg9[%c0_21, %c0_22], %31 {strides = array<i32>} : memref<128x128xf32, #tpu.memory_space<vmem>>, vector<128x128xf32>,
    %c0_23 = arith.constant 0 : index
    %c0_24 = arith.constant 0 : index
    %33 = vector.load %arg7[%c0_23, %c0_24] : memref<128x1xf32, #tpu.memory_space<vmem>>, vector<128x1xf32>
    tpu.vector_store %arg7[%c0_23, %c0_24], %13 {strides = array<i32>} : memref<128x1xf32, #tpu.memory_space<vmem>>, vector<128x1xf32>,
    %c1_i32 = arith.constant 1 : i32
    %34 = arith.cmpi eq, %arg2, %c1_i32 : i32
    %35 = arith.extui %34 : i1 to i32
    %c0_i32_25 = arith.constant 0 : i32
    %36 = arith.cmpi ne, %35, %c0_i32_25 : i32
    scf.if %36 {
      %c0_26 = arith.constant 0 : index
      %c0_27 = arith.constant 0 : index
      %37 = vector.load %arg9[%c0_26, %c0_27] : memref<128x128xf32, #tpu.memory_space<vmem>>, vector<128x128xf32>
      %c0_28 = arith.constant 0 : index
      %c0_29 = arith.constant 0 : index
      %38 = vector.load %arg8[%c0_28, %c0_29] : memref<128x1xf32, #tpu.memory_space<vmem>>, vector<128x1xf32>
      %39 = tpu.reciprocal %38 : vector<128x1xf32> -> vector<128x1xf32>
      %40 = vector.broadcast %39 : vector<128x1xf32> to vector<128x128xf32>
      %41 = arith.mulf %37, %40 : vector<128x128xf32>
      %c0_30 = arith.constant 0 : index
      %c0_31 = arith.constant 0 : index
      %c0_32 = arith.constant 0 : index
      %42 = vector.load %arg6[%c0_30, %c0_31, %c0_32] : memref<1x128x128xf32, #tpu.memory_space<vmem>>, vector<1x128x128xf32>
      %43 = vector.shape_cast %42 : vector<1x128x128xf32> to vector<128x128xf32>
      %44 = vector.shape_cast %41 : vector<128x128xf32> to vector<1x128x128xf32>
      tpu.vector_store %arg6[%c0_30, %c0_31, %c0_32], %44 {strides = array<i32>} : memref<1x128x128xf32, #tpu.memory_space<vmem>>, vector<1x128x128xf32>,
    } else {
    }
    return
  }
  func.func @transform_0(%arg0: i32, %arg1: i32, %arg2: i32) -> (i32, i32, i32) {
    %c0_i32 = arith.constant 0 : i32
    %c0_i32_0 = arith.constant 0 : i32
    return %arg0, %arg1, %c0_i32 : i32, i32, i32
  }
  func.func @transform_1(%arg0: i32, %arg1: i32, %arg2: i32) -> (i32, i32, i32) {
    %c0_i32 = arith.constant 0 : i32
    %c0_i32_0 = arith.constant 0 : i32
    return %arg0, %arg2, %c0_i32 : i32, i32, i32
  }
  func.func @transform_2(%arg0: i32, %arg1: i32, %arg2: i32) -> (i32, i32, i32) {
    %c0_i32 = arith.constant 0 : i32
    %c0_i32_0 = arith.constant 0 : i32
    return %arg0, %arg2, %c0_i32 : i32, i32, i32
  }
  func.func @transform_3(%arg0: i32, %arg1: i32, %arg2: i32) -> (i32, i32, i32) {
    %c0_i32 = arith.constant 0 : i32
    %c0_i32_0 = arith.constant 0 : i32
    return %arg0, %arg1, %c0_i32 : i32, i32, i32
  }
}

</mosaic_0001>

<bundles_post_ra>
// kernel: tpu_custom_call.1
= control target key start
LH: loop header
LB: loop body
LE: loop exit
PB: predicated region body
PF: predicated region fallthrough
CT: control target
= control target key end

     0   :  { %8 = vsyncpa [#allocation6], 0  ;;  %s3208_s0 = inlined_call_operand.vmem [shape: f32[2,256,64], index: 0, kind: input, shape index: {}]   ;;  %s3209_s1 = inlined_call_operand.vmem [shape: f32[2,512,64], index: 1, kind: input, shape index: {}]   ;;  %s3210_s2 = inlined_call_operand.vmem [shape: f32[2,512,128], index: 2, kind: input, shape index: {}]   ;;  %s3211_s3 = inlined_call_operand.hbm [shape: f32[2,256,128], index: 3, kind: output, shape index: {}]  }
   0x1   :  { %10 = vsyncpa [#allocation6 + $0x1], 0  ;;  %s2419_s12 = smov 0   ;;  %s2421_s13 = smov 0  }
   0x2   :  { %s2423_s14 = smov 0   ;;  %s2425_s15 = smov 0  }
   0x3   :  { %s2427_s16 = smov 0   ;;  %s2429_s17 = smov 0  }
   0x4   :  { %s2431_s18 = smov 0   ;;  %s2433_s19 = smov 0  }
   0x5   :  { %s2435_s20 = smov 0   ;;  %s2437_s21 = smov 0  }
   0x6 LB: > { %3218 = sst [smem:[#allocation8_spill]] %s2378_s18  ;;  %s1760_s22 = sadd.s32 4294967295, %s2390_s21   ;;  %s2390_s21 = sphi %s2437_s21, %s16_s21   ;;  %s2386_s20 = sphi %s2435_s20, %s3241_s20   ;;  %s2382_s19 = sphi %s2433_s19, %s3236_s19   ;;  %s2378_s18 = sphi %s2431_s18, %s3235_s18   ;;  %s2374_s17 = sphi %s2429_s17, %s3234_s17   ;;  %s2370_s16 = sphi %s2427_s16, %s3233_s16   ;;  %s2366_s15 = sphi %s2425_s15, %s3232_s15   ;;  %s2362_s14 = sphi %s2423_s14, %s3240_s14   ;;  %s2358_s13 = sphi %s2421_s13, %s3239_s13   ;;  %s2354_s12 = sphi %s2419_s12, %s3238_s12  }
   0x7   : > { %3219 = sst [smem:[#allocation9_spill]] %s2382_s19  ;;  %s1761_s23 = sadd.s32 4294967294, %s2390_s21  }
   0x8   : > { %3220 = sst [smem:[#allocation10_spill]] %s2386_s20  ;;  %s28_s24 = sadd.s32 1, %s2378_s18 }
   0x9   : > { %p29_p0 = scmp.ge.s32.totalorder %s28_s24, 2  ;;  %s31_s25 = sadd.s32 1, %s2382_s19 }
   0xa   : > { %s35_s26 = sadd.s32 1, %s2386_s20  ;;  %p138_p1 = scmp.ne.s32.totalorder %s2362_s14, %s2358_s13 }
   0xb   : > { %s3243_s24 = smov (%p29_p0, %s28_s24), 0  ;;  %s3245_s25 = smov (!%p29_p0, %s31_s25), %s2382_s19 }
   0xc   : > { %3221 = sst [smem:[#allocation11_spill]] %s3243_s24  ;;  %p139_p2 = scmp.eq.s32.totalorder %s1760_s22, 7 }
   0xd   : > { %p144_p3 = scmp.ne.s32.totalorder %s2358_s13, %s2354_s12  ;;  %p33_p4 = scmp.ge.s32.totalorder %s3245_s25, 2 }
   0xe   : > { %p145_p5 = scmp.eq.s32.totalorder %s1761_s23, 7  ;;  %p2481_p6 = por %p139_p2, %p138_p1 }
   0xf   : > { %s3247_s25 = smov (%p33_p4, %s3245_s25), 0  ;;  %s3249_s26 = smov (!%p33_p4, %s35_s26), %s2386_s20 }
  0x10   : > { %3223 = sst [smem:[#allocation12_spill]] %s3247_s25  ;;  %p2488_p7 = por %p145_p5, %p144_p3 }
  0x11   : > { %p1764_p8 = scmp.ge.s32.totalorder %s2390_s21, 1  ;;  %p37_p9 = scmp.ge.s32.totalorder %s3249_s26, 2 }
  0x12   : > { %p202_p10 = scmp.lt.s32.totalorder %s2390_s21, 9  ;;  %s124_s29 = ssub.s32 %s2382_s19, %s3247_s25 }
  0x13   : > { %s3251_s26 = smov (%p37_p9, %s3249_s26), 0  ;;  %s128_s5 = sadd.s32 1, %s2362_s14 }
  0x14   : > { %3225 = sst [smem:[#allocation13_spill]] %s3251_s26  ;;  %p203_p11 = pnand %p1764_p8, %p202_p10 }
  0x15   : > { %s123_s30 = ssub.s32 %s2386_s20, %s3251_s26  ;;  %s3215_s7 = sand.u32 (!%p203_p11), 1, %s2358_s13  }
  0x16   : > { %s125_s4 = sor.u32 %s124_s29, %s123_s30  ;;  %206 = sbr.rel (%p203_p11) target bundleno = 1059 (0x423), region = 32 }
  0x17   : > { %p126_p12 = scmp.eq.s32.totalorder %s125_s4, 0  ;;  %s2506_s8 = sshll.u32 (!%p203_p11), %s2370_s16, 4 }
  0x18   : > { %s1765_s9 = sshll.u32 (!%p203_p11), %s3215_s7, 7  ;;  %p249_p13 = scmp.lt.s32.totalorder (!%p203_p11), %s2374_s17, 1 }
  0x19   : > { %s2502_s6 = scalar_select %p126_p12, %s2362_s14, %s128_s5  }
  0x1a   : > { %p251_p0 = scmp.lt.s32.totalorder (!%p203_p11), %s2506_s8, 31  ;;  %s1769_s23 = sshll.u32 (!%p203_p11), %s2366_s15, 5 }
  0x1b   : > { %3226 = sst [smem:[#allocation14_spill]] %s2502_s6  ;;  %p261_p1 = scmp.lt.s32.totalorder (!%p203_p11), %s1769_s23, 63 }
  0x1c   : > { %p1775_p2 = scmp.ne.s32.totalorder (!%p203_p11), %s2366_s15, 0 }
  0x1d   : > { %s250_s10 = scalar_select %p249_p13, %s2374_s17, 1 }
  0x1e   : > { %s252_s11 = scalar_select %p251_p0, %s2506_s8, 31 }
  0x1f   : > { %s1767_s22 = sshll.u32 %s250_s10, 5  ;;  %s1770_s16 = sshll.u32 %s250_s10, 6  ;;  %vm283_vm0 = vcmask (!%p1775_p2), 7168   ;;  %v2392_v0 = vmov (!%p1775_p2), -inf   ;;  %v2393_v1 = vmov (!%p1775_p2), 0.0  }
  0x20   : > { %s254_s29 = sadd.s32 %s1767_s22, %s252_s11  ;;  %s3253_s23 = smov (!%p261_p1, %s1769_s23), 63  ;;  %284 = vst.msk [vmem:[#allocation2] sm:$0xff] (!%p1775_p2), %vm283_vm0, %v2392_v0  ;;  %285 = vst.msk [vmem:[#allocation2 + $0x8] sm:$0xff] (!%p1775_p2), %vm283_vm0, %v2392_v0 }
  0x21   : > { %s1768_s30 = sshll.u32 %s254_s29, 3  ;;  %s264_s25 = sadd.s32 %s1770_s16, %s3253_s23  ;;  %286 = vst.msk [vmem:[#allocation2 + $0x10] sm:$0xff] (!%p1775_p2), %vm283_vm0, %v2392_v0  ;;  %287 = vst.msk [vmem:[#allocation2 + $0x18] sm:$0xff] (!%p1775_p2), %vm283_vm0, %v2392_v0 }
  0x22   : > { %s2518_s26 = scalar_lea.vmem %s3208_s0, %s1768_s30  ;;  %s1771_s24 = sshll.u32 %s264_s25, 3  ;;  %288 = vst.msk [vmem:[#allocation2 + $0x20] sm:$0xff] (!%p1775_p2), %vm283_vm0, %v2392_v0  ;;  %289 = vst.msk [vmem:[#allocation2 + $0x28] sm:$0xff] (!%p1775_p2), %vm283_vm0, %v2392_v0 }
  0x23   : > { %s2523_s19 = scalar_lea.vmem %s3209_s1, %s1771_s24  ;;  %s2528_s11 = scalar_lea.vmem %s3210_s2, %s1771_s24  ;;  %290 = vst.msk [vmem:[#allocation2 + $0x30] sm:$0xff] (!%p1775_p2), %vm283_vm0, %v2392_v0  ;;  %291 = vst.msk [vmem:[#allocation2 + $0x38] sm:$0xff] (!%p1775_p2), %vm283_vm0, %v2392_v0 }
  0x24   : > { %s2530_s22 = scalar_lea.vmem [#allocation5], %s1765_s9  ;;  %282 = sbr.rel (%p1775_p2) target bundleno = 56 (0x38), region = 36  ;;  %292 = vst.msk [vmem:[#allocation2 + $0x40] sm:$0xff] (!%p1775_p2), %vm283_vm0, %v2392_v0  ;;  %293 = vst.msk [vmem:[#allocation2 + $0x48] sm:$0xff] (!%p1775_p2), %vm283_vm0, %v2392_v0 }
  0x25   : > { %294 = vst.msk [vmem:[#allocation2 + $0x50] sm:$0xff] (!%p1775_p2), %vm283_vm0, %v2392_v0  ;;  %295 = vst.msk [vmem:[#allocation2 + $0x58] sm:$0xff] (!%p1775_p2), %vm283_vm0, %v2392_v0 }
  0x26   : > { %296 = vst.msk [vmem:[#allocation2 + $0x60] sm:$0xff] (!%p1775_p2), %vm283_vm0, %v2392_v0  ;;  %297 = vst.msk [vmem:[#allocation2 + $0x68] sm:$0xff] (!%p1775_p2), %vm283_vm0, %v2392_v0 }
  0x27   : > { %298 = vst.msk [vmem:[#allocation2 + $0x70] sm:$0xff] (!%p1775_p2), %vm283_vm0, %v2392_v0  ;;  %299 = vst.msk [vmem:[#allocation2 + $0x78] sm:$0xff] (!%p1775_p2), %vm283_vm0, %v2392_v0 }
  0x28   : > { %300 = vst.msk [vmem:[#allocation3] sm:$0xff] (!%p1775_p2), %vm283_vm0, %v2393_v1  ;;  %301 = vst.msk [vmem:[#allocation3 + $0x8] sm:$0xff] (!%p1775_p2), %vm283_vm0, %v2393_v1 }
  0x29   : > { %302 = vst.msk [vmem:[#allocation3 + $0x10] sm:$0xff] (!%p1775_p2), %vm283_vm0, %v2393_v1  ;;  %303 = vst.msk [vmem:[#allocation3 + $0x18] sm:$0xff] (!%p1775_p2), %vm283_vm0, %v2393_v1 }
  0x2a   : > { %304 = vst.msk [vmem:[#allocation3 + $0x20] sm:$0xff] (!%p1775_p2), %vm283_vm0, %v2393_v1  ;;  %305 = vst.msk [vmem:[#allocation3 + $0x28] sm:$0xff] (!%p1775_p2), %vm283_vm0, %v2393_v1 }
  0x2b   : > { %306 = vst.msk [vmem:[#allocation3 + $0x30] sm:$0xff] %vm283_vm0, %v2393_v1  ;;  %307 = vst.msk [vmem:[#allocation3 + $0x38] sm:$0xff] %vm283_vm0, %v2393_v1 }
  0x2c   : > { %308 = vst.msk [vmem:[#allocation3 + $0x40] sm:$0xff] %vm283_vm0, %v2393_v1  ;;  %309 = vst.msk [vmem:[#allocation3 + $0x48] sm:$0xff] %vm283_vm0, %v2393_v1 }
  0x2d   : > { %310 = vst.msk [vmem:[#allocation3 + $0x50] sm:$0xff] %vm283_vm0, %v2393_v1  ;;  %311 = vst.msk [vmem:[#allocation3 + $0x58] sm:$0xff] %vm283_vm0, %v2393_v1 }
  0x2e   : > { %312 = vst.msk [vmem:[#allocation3 + $0x60] sm:$0xff] %vm283_vm0, %v2393_v1  ;;  %313 = vst.msk [vmem:[#allocation3 + $0x68] sm:$0xff] %vm283_vm0, %v2393_v1 }
  0x2f   : > { %314 = vst.msk [vmem:[#allocation3 + $0x70] sm:$0xff] %vm283_vm0, %v2393_v1  ;;  %315 = vst.msk [vmem:[#allocation3 + $0x78] sm:$0xff] %vm283_vm0, %v2393_v1 }
  0x30   : > { %316 = vst [vmem:[#allocation4] sm:$0xff] %v2393_v1  ;;  %317 = vst [vmem:[#allocation4 + $0x8] sm:$0xff] %v2393_v1 }
  0x31   : > { %318 = vst [vmem:[#allocation4 + $0x10] sm:$0xff] %v2393_v1  ;;  %319 = vst [vmem:[#allocation4 + $0x18] sm:$0xff] %v2393_v1 }
  0x32   : > { %320 = vst [vmem:[#allocation4 + $0x20] sm:$0xff] %v2393_v1  ;;  %321 = vst [vmem:[#allocation4 + $0x28] sm:$0xff] %v2393_v1 }
  0x33   : > { %322 = vst [vmem:[#allocation4 + $0x30] sm:$0xff] %v2393_v1  ;;  %323 = vst [vmem:[#allocation4 + $0x38] sm:$0xff] %v2393_v1 }
  0x34   : > { %324 = vst [vmem:[#allocation4 + $0x40] sm:$0xff] %v2393_v1  ;;  %325 = vst [vmem:[#allocation4 + $0x48] sm:$0xff] %v2393_v1 }
  0x35   : > { %326 = vst [vmem:[#allocation4 + $0x50] sm:$0xff] %v2393_v1  ;;  %327 = vst [vmem:[#allocation4 + $0x58] sm:$0xff] %v2393_v1 }
  0x36   : > { %328 = vst [vmem:[#allocation4 + $0x60] sm:$0xff] %v2393_v1  ;;  %329 = vst [vmem:[#allocation4 + $0x68] sm:$0xff] %v2393_v1 }
  0x37   : > { %330 = vst [vmem:[#allocation4 + $0x70] sm:$0xff] %v2393_v1  ;;  %331 = vst [vmem:[#allocation4 + $0x78] sm:$0xff] %v2393_v1 }
  0x38 PF: > { %v380_v2 = vld [vmem:[%s2523_s19 + $0x80] sm:$0xff]  ;;  %v381_v3 = vld [vmem:[%s2523_s19 + $0x88] sm:$0xff]  ;;  %vm396_vm1 = vcmask 523264   ;;  %v382_v8 = vld [vmem:[%s2523_s19 + $0x90] sm:$0xff]  ;;  %vm1102_vm3 = vcmask 7168   ;;  %p1824_p3 = scmp.ne.s32.totalorder %s2366_s15, 1 }
  0x39   : > { %v364_v4 = vld [vmem:[%s2523_s19] sm:$0xff]  ;;  %v1975_v5 = vpack.c.bf16 %v381_v3, %v380_v2  ;;  %vm2570_vm2 = vmpackc.low %vm396_vm1, %vm396_vm1  ;;  %v365_v7 = vld [vmem:[%s2523_s19 + $0x8] sm:$0xff] }
  0x3a   : > { %v1978_v9 = vpack.c.bf16 %v365_v7, %v364_v4  ;;  %v383_v10 = vld [vmem:[%s2523_s19 + $0x98] sm:$0xff]  ;;  %v366_v12 = vld [vmem:[%s2523_s19 + $0x10] sm:$0xff]  ;;  %v384_v14 = vld [vmem:[%s2523_s19 + $0xa0] sm:$0xff] }
  0x3b   : > { %1977 = vmatprep.subr.msk.bf16.mxu0 %vm2570_vm2, %v1975_v5  ;;  %v1981_v11 = vpack.c.bf16 %v383_v10, %v382_v8  ;;  %v367_v13 = vld [vmem:[%s2523_s19 + $0x18] sm:$0xff]  ;;  %v385_v15 = vld [vmem:[%s2523_s19 + $0xa8] sm:$0xff]  ;;  %v332_v18 = vld [vmem:[%s2518_s26] sm:$0xff] }
  0x3c   : > { %1980 = vmatpush3.bf16.xpose.msk.msra.mxu0 %vm2570_vm2, %v1978_v9  ;;  %v1984_v16 = vpack.c.bf16 %v367_v13, %v366_v12  ;;  %v1987_v17 = vpack.c.bf16 %v385_v15, %v384_v14  ;;  %v348_v19 = vmul.f32 0.125, %v332_v18  ;;  %v368_v20 = vld [vmem:[%s2523_s19 + $0x20] sm:$0xff]  ;;  %v369_v21 = vld [vmem:[%s2523_s19 + $0x28] sm:$0xff]  ;;  %v386_v22 = vld [vmem:[%s2523_s19 + $0xb0] sm:$0xff] }
  0x3d   : > { %1983 = vmatprep.subr.msk.bf16.mxu0 %vm2570_vm2, %v1981_v11  ;;  %v387_v23 = vld [vmem:[%s2523_s19 + $0xb8] sm:$0xff]  ;;  %v1990_v24 = vpack.c.bf16 %v369_v21, %v368_v20  ;;  %v370_v26 = vld [vmem:[%s2523_s19 + $0x30] sm:$0xff]  ;;  %v388_v28 = vld [vmem:[%s2523_s19 + $0xc0] sm:$0xff] }
  0x3e   : > { %1863 = vmatprep.mubr.msk.f32.mxu0 %vm396_vm1, %v348_v19  ;;  %v1993_v25 = vpack.c.bf16 %v387_v23, %v386_v22  ;;  %v371_v27 = vld [vmem:[%s2523_s19 + $0x38] sm:$0xff]  ;;  %v389_v29 = vld [vmem:[%s2523_s19 + $0xc8] sm:$0xff]  ;;  %v372_v32 = vld [vmem:[%s2523_s19 + $0x40] sm:$0xff] }
  0x3f   : > { %v1996_v30 = vpack.c.bf16 %v371_v27, %v370_v26  ;;  %v1999_v31 = vpack.c.bf16 %v389_v29, %v388_v28  ;;  %v373_v33 = vld [vmem:[%s2523_s19 + $0x48] sm:$0xff]  ;;  %v390_v34 = vld [vmem:[%s2523_s19 + $0xd0] sm:$0xff]  ;;  %v391_v35 = vld [vmem:[%s2523_s19 + $0xd8] sm:$0xff] }
  0x40   : > { %v2002_v36 = vpack.c.bf16 %v373_v33, %v372_v32  ;;  %v2005_v37 = vpack.c.bf16 %v391_v35, %v390_v34  ;;  %v374_v38 = vld [vmem:[%s2523_s19 + $0x50] sm:$0xff]  ;;  %v375_v39 = vld [vmem:[%s2523_s19 + $0x58] sm:$0xff]  ;;  %v392_v40 = vld [vmem:[%s2523_s19 + $0xe0] sm:$0xff]  ;;  %v2394_v34 = vmov 0  }
  0x41   : > { %v393_v41 = vld [vmem:[%s2523_s19 + $0xe8] sm:$0xff]  ;;  %v2008_v42 = vpack.c.bf16 %v375_v39, %v374_v38  ;;  %v376_v44 = vld [vmem:[%s2523_s19 + $0x60] sm:$0xff]  ;;  %v394_v46 = vld [vmem:[%s2523_s19 + $0xf0] sm:$0xff]  ;;  %2148 = vset.pattern.permute.xlu0 %v2394_v34  ;;  %2149 = vset.pattern.permute.xlu1 %v2394_v34 }
  0x42   : > { %v2011_v43 = vpack.c.bf16 %v393_v41, %v392_v40  ;;  %v377_v45 = vld [vmem:[%s2523_s19 + $0x68] sm:$0xff]  ;;  %v395_v47 = vld [vmem:[%s2523_s19 + $0xf8] sm:$0xff]  ;;  %v378_v50 = vld [vmem:[%s2523_s19 + $0x70] sm:$0xff] }
  0x43   : > { %v2014_v48 = vpack.c.bf16 %v377_v45, %v376_v44  ;;  %v2017_v49 = vpack.c.bf16 %v395_v47, %v394_v46  ;;  %v379_v51 = vld [vmem:[%s2523_s19 + $0x78] sm:$0xff]  ;;  %v333_v53 = vld [vmem:[%s2518_s26 + $0x8] sm:$0xff]  ;;  %v334_v55 = vld [vmem:[%s2518_s26 + $0x10] sm:$0xff] }
  0x44   : > { %1986 = vmatpush3.bf16.xpose.msk.msra.mxu0 %vm2570_vm2, %v1984_v16  ;;  %v2020_v52 = vpack.c.bf16 %v379_v51, %v378_v50  ;;  %v349_v54 = vmul.f32 0.125, %v333_v53  ;;  %v350_v56 = vmul.f32 0.125, %v334_v55  ;;  %v335_v57 = vld [vmem:[%s2518_s26 + $0x18] sm:$0xff]  ;;  %v336_v59 = vld [vmem:[%s2518_s26 + $0x20] sm:$0xff]  ;;  %v337_v61 = vld [vmem:[%s2518_s26 + $0x28] sm:$0xff] }
  0x45   : > { %1989 = vmatprep.subr.msk.bf16.mxu0 %vm2570_vm2, %v1987_v17  ;;  %v351_v58 = vmul.f32 0.125, %v335_v57  ;;  %v352_v60 = vmul.f32 0.125, %v336_v59  ;;  %v353_v62 = vmul.f32 0.125, %v337_v61  ;;  %v338_v63 = vld [vmem:[%s2518_s26 + $0x30] sm:$0xff]  ;;  %v339_v1 = vld [vmem:[%s2518_s26 + $0x38] sm:$0xff]  ;;  %v340_v3 = vld [vmem:[%s2518_s26 + $0x40] sm:$0xff] }
  0x46   : > { %v354_v0 = vmul.f32 0.125, %v338_v63  ;;  %v355_v2 = vmul.f32 0.125, %v339_v1  ;;  %v356_v4 = vmul.f32 0.125, %v340_v3  ;;  %v341_v5 = vld [vmem:[%s2518_s26 + $0x48] sm:$0xff]  ;;  %v342_v7 = vld [vmem:[%s2518_s26 + $0x50] sm:$0xff]  ;;  %v343_v9 = vld [vmem:[%s2518_s26 + $0x58] sm:$0xff] }
  0x47   : > { %v357_v6 = vmul.f32 0.125, %v341_v5  ;;  %v358_v8 = vmul.f32 0.125, %v342_v7  ;;  %v359_v10 = vmul.f32 0.125, %v343_v9  ;;  %v344_v11 = vld [vmem:[%s2518_s26 + $0x60] sm:$0xff]  ;;  %v345_v13 = vld [vmem:[%s2518_s26 + $0x68] sm:$0xff]  ;;  %v346_v15 = vld [vmem:[%s2518_s26 + $0x70] sm:$0xff] }
  0x48   : > { %v360_v12 = vmul.f32 0.125, %v344_v11  ;;  %v361_v14 = vmul.f32 0.125, %v345_v13  ;;  %v362_v16 = vmul.f32 0.125, %v346_v15  ;;  %v347_v17 = vld [vmem:[%s2518_s26 + $0x78] sm:$0xff]  ;;  %v1248_v5 = vld [vmem:[%s2528_s11 + $0x88] sm:$0xff]  ;;  %v1249_v9 = vld [vmem:[%s2528_s11 + $0x90] sm:$0xff] }
  0x49   : > { %v363_v18 = vmul.f32 0.125, %v347_v17  ;;  %v1233_v13 = vld [vmem:[%s2528_s11 + $0x10] sm:$0xff]  ;;  %v1251_v15 = vld [vmem:[%s2528_s11 + $0xa0] sm:$0xff] }
  0x4c   : > { %1992 = vmatpush3.bf16.xpose.msk.msra.mxu0 %vm2570_vm2, %v1990_v24 }
  0x4d   : > { %1995 = vmatprep.subr.msk.bf16.mxu0 %vm2570_vm2, %v1993_v25 }
  0x54   : > { %1998 = vmatpush3.bf16.xpose.msk.msra.mxu0 %vm2570_vm2, %v1996_v30 }
  0x55   : > { %2001 = vmatprep.subr.msk.bf16.mxu0 %vm2570_vm2, %v1999_v31 }
  0x5c   : > { %2004 = vmatpush3.bf16.xpose.msk.msra.mxu0 %vm2570_vm2, %v2002_v36 }
  0x5d   : > { %2007 = vmatprep.subr.msk.bf16.mxu0 %vm2570_vm2, %v2005_v37 }
  0x64   : > { %2010 = vmatpush3.bf16.xpose.msk.msra.mxu0 %vm2570_vm2, %v2008_v42 }
  0x65   : > { %2013 = vmatprep.subr.msk.bf16.mxu0 %vm2570_vm2, %v2011_v43 }
  0x6c   : > { %2016 = vmatpush3.bf16.xpose.msk.msra.mxu0 %vm2570_vm2, %v2014_v48 }
  0x6d   : > { %2019 = vmatprep.subr.msk.bf16.mxu0 %vm2570_vm2, %v2017_v49 }
  0x74   : > { %2022 = vmatpush3.bf16.xpose.msk.msra.mxu0 %vm2570_vm2, %v2020_v52 }
  0x7b   : > { %1864 = vmatmul.mubr.msk.f32.vlgmr.msra.gmra.mrb[0].mxu0 %vm396_vm1, %v348_v19 }
  0x7c   : > { %1865 = vmatprep.mubr.msk.f32.mxu0 %vm396_vm1, %v349_v54 }
  0x7f   : > { %1866 = vmatmul.mubr.msk.f32.gmra.mrb[2].mxu0 %vm396_vm1, %v349_v54 }
  0x80   : > { %1867 = vmatprep.mubr.msk.f32.mxu0 %vm396_vm1, %v350_v56 }
  0x83   : > { %1868 = vmatmul.mubr.msk.f32.gmra.mrb[4].mxu0 %vm396_vm1, %v350_v56 }
  0x84   : > { %1869 = vmatprep.mubr.msk.f32.mxu0 %vm396_vm1, %v351_v58 }
  0x87   : > { %1870 = vmatmul.mubr.msk.f32.gmra.mrb[6].mxu0 %vm396_vm1, %v351_v58 }
  0x88   : > { %1871 = vmatprep.mubr.msk.f32.mxu0 %vm396_vm1, %v352_v60 }
  0x8b   : > { %1872 = vmatmul.mubr.msk.f32.gmra.mrb[8].mxu0 %vm396_vm1, %v352_v60 }
  0x8c   : > { %1873 = vmatprep.mubr.msk.f32.mxu0 %vm396_vm1, %v353_v62 }
  0x8f   : > { %1874 = vmatmul.mubr.msk.f32.gmra.mrb[10].mxu0 %vm396_vm1, %v353_v62 }
  0x90   : > { %1875 = vmatprep.mubr.msk.f32.mxu0 %vm396_vm1, %v354_v0 }
  0x93   : > { %1876 = vmatmul.mubr.msk.f32.gmra.mrb[12].mxu0 %vm396_vm1, %v354_v0 }
  0x94   : > { %1877 = vmatprep.mubr.msk.f32.mxu0 %vm396_vm1, %v355_v2 }
  0x97   : > { %1878 = vmatmul.mubr.msk.f32.gmra.mrb[14].mxu0 %vm396_vm1, %v355_v2 }
  0x98   : > { %1879 = vmatprep.mubr.msk.f32.mxu0 %vm396_vm1, %v356_v4 }
  0x9b   : > { %1880 = vmatmul.mubr.msk.f32.gmra.mrb[16].mxu0 %vm396_vm1, %v356_v4  ;;  %v1247_v4 = vld [vmem:[%s2528_s11 + $0x80] sm:$0xff] }
  0x9c   : > { %1881 = vmatprep.mubr.msk.f32.mxu0 %vm396_vm1, %v357_v6  ;;  %v2023_v7 = vpack.c.bf16 %v1248_v5, %v1247_v4  ;;  %v1240_v4 = vld [vmem:[%s2528_s11 + $0x48] sm:$0xff] }
  0x9e   : > { %2024 = vmatprep.subr.bf16.mxu1 %v2023_v7 }
  0x9f   : > { %1882 = vmatmul.mubr.msk.f32.gmra.mrb[18].mxu0 %vm396_vm1, %v357_v6  ;;  %v1231_v6 = vld [vmem:[%s2528_s11] sm:$0xff] }
  0xa0   : > { %1883 = vmatprep.mubr.msk.f32.mxu0 %vm396_vm1, %v358_v8 }
  0xa3   : > { %1884 = vmatmul.mubr.msk.f32.gmra.mrb[20].mxu0 %vm396_vm1, %v358_v8  ;;  %v1232_v8 = vld [vmem:[%s2528_s11 + $0x8] sm:$0xff] }
  0xa4   : > { %1885 = vmatprep.mubr.msk.f32.mxu0 %vm396_vm1, %v359_v10  ;;  %v2025_v11 = vpack.c.bf16 %v1232_v8, %v1231_v6  ;;  %v1257_v8 = vld [vmem:[%s2528_s11 + $0xd0] sm:$0xff] }
  0xa6   : > { %2026 = vmatpush3.bf16.msra.mxu1 %v2025_v11 }
  0xa7   : > { %1886 = vmatmul.mubr.msk.f32.gmra.mrb[22].mxu0 %vm396_vm1, %v359_v10  ;;  %v1250_v10 = vld [vmem:[%s2528_s11 + $0x98] sm:$0xff] }
  0xa8   : > { %1887 = vmatprep.mubr.msk.f32.mxu0 %vm396_vm1, %v360_v12 }
  0xab   : > { %1888 = vmatmul.mubr.msk.f32.gmra.mrb[24].mxu0 %vm396_vm1, %v360_v12  ;;  %v2027_v12 = vpack.c.bf16 %v1250_v10, %v1249_v9  ;;  %v1258_v9 = vld [vmem:[%s2528_s11 + $0xd8] sm:$0xff]  ;;  %v2814_v10 = vld [vmem:[#allocation2 + $0x10] sm:$0xff] }
  0xac   : > { %1889 = vmatprep.mubr.msk.f32.mxu0 %vm396_vm1, %v361_v14  ;;  %v2043_v11 = vpack.c.bf16 %v1258_v9, %v1257_v8 }
  0xad   : > { %2028 = vmatprep.subr.bf16.mxu1 %v2027_v12  ;;  %v1241_v12 = vld [vmem:[%s2528_s11 + $0x50] sm:$0xff] }
  0xaf   : > { %1890 = vmatmul.mubr.msk.f32.gmra.mrb[26].mxu0 %vm396_vm1, %v361_v14  ;;  %v1234_v14 = vld [vmem:[%s2528_s11 + $0x18] sm:$0xff] }
  0xb0   : > { %1891 = vmatprep.mubr.msk.f32.mxu0 %vm396_vm1, %v362_v16  ;;  %v2029_v17 = vpack.c.bf16 %v1234_v14, %v1233_v13  ;;  %v1242_v13 = vld [vmem:[%s2528_s11 + $0x58] sm:$0xff] }
  0xb1   : > { %v2045_v14 = vpack.c.bf16 %v1242_v13, %v1241_v12 }
  0xb2   : > { %2030 = vmatpush3.bf16.msra.mxu1 %v2029_v17  ;;  %v1259_v17 = vld [vmem:[%s2528_s11 + $0xe0] sm:$0xff] }
  0xb3   : > { %1892 = vmatmul.mubr.msk.f32.gmra.mrb[28].mxu0 %vm396_vm1, %v362_v16  ;;  %v1252_v16 = vld [vmem:[%s2528_s11 + $0xa8] sm:$0xff] }
  0xb4   : > { %1893 = vmatprep.mubr.msk.f32.mxu0 %vm396_vm1, %v363_v18 }
  0xb7   : > { %1894 = vmatmul.mubr.msk.f32.gmra.mrb[30].mxu0 %vm396_vm1, %v363_v18  ;;  %v2031_v18 = vpack.c.bf16 %v1252_v16, %v1251_v15 }
  0xb9   : > { %2032 = vmatprep.subr.bf16.mxu1 %v2031_v18  ;;  %v1260_v18 = vld [vmem:[%s2528_s11 + $0xe8] sm:$0xff] }
 0x14e   : > { %v2683_v19 = vpop.f32.mrb[0].mxu0 }
 0x14f   : > { %v2685_v20 = vpop.f32.mrb[1].mxu0 }
 0x150   : > { %v718_v21 = vmax.f32 %v2683_v19, %v2685_v20 }
 0x152   : > { %719 = vmax.xlane.f32.xlu0 %v718_v21  ;;  %v2689_v22 = vpop.f32.mrb[2].mxu0  ;;  %v1235_v21 = vld [vmem:[%s2528_s11 + $0x20] sm:$0xff] }
 0x153   : > { %v2691_v23 = vpop.f32.mrb[3].mxu0 }
 0x154   : > { %v721_v24 = vmax.f32 %v2689_v22, %v2691_v23 }
 0x156   : > { %722 = vmax.xlane.f32.xlu0 %v721_v24  ;;  %v2695_v25 = vpop.f32.mrb[4].mxu0  ;;  %v1236_v24 = vld [vmem:[%s2528_s11 + $0x28] sm:$0xff] }
 0x157   : > { %v2697_v26 = vpop.f32.mrb[5].mxu0 }
 0x158   : > { %v724_v27 = vmax.f32 %v2695_v25, %v2697_v26 }
 0x15a   : > { %725 = vmax.xlane.f32.xlu1 %v724_v27  ;;  %v2701_v28 = vpop.f32.mrb[6].mxu0  ;;  %v1253_v27 = vld [vmem:[%s2528_s11 + $0xb0] sm:$0xff] }
 0x15b   : > { %v2703_v29 = vpop.f32.mrb[7].mxu0 }
 0x15c   : > { %v727_v30 = vmax.f32 %v2701_v28, %v2703_v29 }
 0x15e   : > { %728 = vmax.xlane.f32.xlu1 %v727_v30  ;;  %v2707_v31 = vpop.f32.mrb[8].mxu0  ;;  %v1254_v30 = vld [vmem:[%s2528_s11 + $0xb8] sm:$0xff] }
 0x15f   : > { %v2709_v32 = vpop.f32.mrb[9].mxu0  ;;  %v2035_v34 = vpack.c.bf16 %v1254_v30, %v1253_v27  ;;  %v1243_v27 = vld [vmem:[%s2528_s11 + $0x60] sm:$0xff]  ;;  %v1244_v30 = vld [vmem:[%s2528_s11 + $0x68] sm:$0xff] }
 0x160   : > { %v730_v33 = vmax.f32 %v2707_v31, %v2709_v32 }
 0x162   : > { %731 = vmax.xlane.f32.xlu0 %v730_v33  ;;  %v2713_v35 = vpop.f32.mrb[10].mxu0  ;;  %v2033_v33 = vpack.c.bf16 %v1236_v24, %v1235_v21  ;;  %v2826_v21 = vld [vmem:[#allocation2 + $0x18] sm:$0xff]  ;;  %v2047_v24 = vpack.c.bf16 %v1260_v18, %v1259_v17  ;;  %v2872_v18 = vld [vmem:[#allocation2 + $0x40] sm:$0xff] }
 0x163   : > { %v2715_v36 = vpop.f32.mrb[11].mxu0 }
 0x164   : > { %v733_v37 = vmax.f32 %v2713_v35, %v2715_v36  ;;  %2034 = vmatpush3.bf16.msra.mxu1 %v2033_v33  ;;  %v2049_v33 = vpack.c.bf16 %v1244_v30, %v1243_v27  ;;  %v2880_v30 = vld [vmem:[#allocation2 + $0x48] sm:$0xff] }
 0x165   : > { %2036 = vmatprep.subr.bf16.mxu1 %v2035_v34 }
 0x166   : > { %734 = vmax.xlane.f32.xlu1 %v733_v37  ;;  %v2719_v38 = vpop.f32.mrb[12].mxu0  ;;  %v1237_v37 = vld [vmem:[%s2528_s11 + $0x30] sm:$0xff] }
 0x167   : > { %v2721_v39 = vpop.f32.mrb[13].mxu0 }
 0x168   : > { %v736_v40 = vmax.f32 %v2719_v38, %v2721_v39 }
 0x16a   : > { %737 = vmax.xlane.f32.xlu0 %v736_v40  ;;  %v2725_v41 = vpop.f32.mrb[14].mxu0  ;;  %v1238_v40 = vld [vmem:[%s2528_s11 + $0x38] sm:$0xff] }
 0x16b   : > { %v2727_v42 = vpop.f32.mrb[15].mxu0 }
 0x16c   : > { %v739_v43 = vmax.f32 %v2725_v41, %v2727_v42 }
 0x16e   : > { %740 = vmax.xlane.f32.xlu1 %v739_v43  ;;  %v2731_v44 = vpop.f32.mrb[16].mxu0  ;;  %v2037_v43 = vpack.c.bf16 %v1238_v40, %v1237_v37  ;;  %v1261_v40 = vld [vmem:[%s2528_s11 + $0xf0] sm:$0xff] }
 0x16f   : > { %v2733_v45 = vpop.f32.mrb[17].mxu0 }
 0x170   : > { %v742_v46 = vmax.f32 %v2731_v44, %v2733_v45  ;;  %2038 = vmatpush3.bf16.msra.mxu1 %v2037_v43  ;;  %v1262_v43 = vld [vmem:[%s2528_s11 + $0xf8] sm:$0xff] }
 0x172   : > { %743 = vmax.xlane.f32.xlu0 %v742_v46  ;;  %v2737_v47 = vpop.f32.mrb[18].mxu0  ;;  %v2795_v46 = vld [vmem:[#allocation2] sm:$0xff] }
 0x173   : > { %v2739_v48 = vpop.f32.mrb[19].mxu0 }
 0x174   : > { %v745_v49 = vmax.f32 %v2737_v47, %v2739_v48 }
 0x176   : > { %746 = vmax.xlane.f32.xlu1 %v745_v49  ;;  %v2743_v50 = vpop.f32.mrb[20].mxu0 }
 0x177   : > { %v2745_v51 = vpop.f32.mrb[21].mxu0 }
 0x178   : > { %v748_v52 = vmax.f32 %v2743_v50, %v2745_v51 }
 0x17a   : > { %749 = vmax.xlane.f32.xlu0 %v748_v52  ;;  %v2749_v53 = vpop.f32.mrb[22].mxu0 }
 0x17b   : > { %v2751_v54 = vpop.f32.mrb[23].mxu0 }
 0x17c   : > { %v751_v55 = vmax.f32 %v2749_v53, %v2751_v54 }
 0x17e   : > { %752 = vmax.xlane.f32.xlu1 %v751_v55  ;;  %v2755_v56 = vpop.f32.mrb[24].mxu0  ;;  %v1255_v55 = vld [vmem:[%s2528_s11 + $0xc0] sm:$0xff] }
 0x17f   : > { %v2757_v57 = vpop.f32.mrb[25].mxu0 }
 0x180   : > { %v754_v58 = vmax.f32 %v2755_v56, %v2757_v57 }
 0x182   : > { %755 = vmax.xlane.f32.xlu0 %v754_v58  ;;  %v2761_v59 = vpop.f32.mrb[26].mxu0  ;;  %v1256_v58 = vld [vmem:[%s2528_s11 + $0xc8] sm:$0xff] }
 0x183   : > { %v2763_v60 = vpop.f32.mrb[27].mxu0 }
 0x184   : > { %v757_v61 = vmax.f32 %v2761_v59, %v2763_v60 }
 0x186   : > { %758 = vmax.xlane.f32.xlu1 %v757_v61  ;;  %v2767_v62 = vpop.f32.mrb[28].mxu0  ;;  %v2802_v61 = vld [vmem:[#allocation2 + $0x8] sm:$0xff] }
 0x187   : > { %v2769_v63 = vpop.f32.mrb[29].mxu0 }
 0x188   : > { %v760_v0 = vmax.f32 %v2767_v62, %v2769_v63 }
 0x18a   : > { %761 = vmax.xlane.f32.xlu0 %v760_v0  ;;  %v2773_v1 = vpop.f32.mrb[30].mxu0  ;;  %v2039_v0 = vpack.c.bf16 %v1256_v58, %v1255_v55  ;;  %v2051_v55 = vpack.c.bf16 %v1262_v43, %v1261_v40  ;;  %v1245_v58 = vld [vmem:[%s2528_s11 + $0x70] sm:$0xff] }
 0x18b   : > { %v2775_v2 = vpop.f32.mrb[31].mxu0  ;;  %v2888_v40 = vld [vmem:[#allocation2 + $0x50] sm:$0xff] }
 0x18c   : > { %v763_v3 = vmax.f32 %v2773_v1, %v2775_v2  ;;  %2040 = vmatprep.subr.bf16.mxu1 %v2039_v0  ;;  %v1246_v0 = vld [vmem:[%s2528_s11 + $0x78] sm:$0xff] }
 0x18e   : > { %764 = vmax.xlane.f32.xlu1 %v763_v3  ;;  %v1239_v3 = vld [vmem:[%s2528_s11 + $0x40] sm:$0xff] }
 0x18f   : > { %v2041_v5 = vpack.c.bf16 %v1240_v4, %v1239_v3  ;;  %v2053_v3 = vpack.c.bf16 %v1246_v0, %v1245_v58  ;;  %v2896_v58 = vld [vmem:[#allocation2 + $0x58] sm:$0xff] }
 0x191   : > { %2042 = vmatpush3.bf16.msra.mxu1 %v2041_v5 }
 0x192   : > { %2044 = vmatprep.subr.bf16.mxu1 %v2043_v11  ;;  %v2856_v11 = vld [vmem:[#allocation2 + $0x30] sm:$0xff] }
 0x195   : > { %2046 = vmatpush3.bf16.msra.mxu1 %v2045_v14  ;;  %v2864_v14 = vld [vmem:[#allocation2 + $0x38] sm:$0xff] }
 0x196   : > { %2048 = vmatprep.subr.bf16.mxu1 %v2047_v24 }
 0x199   : > { %2050 = vmatpush3.bf16.msra.mxu1 %v2049_v33 }
 0x19a   : > { %2052 = vmatprep.subr.bf16.mxu1 %v2051_v55 }
 0x19d   : > { %2054 = vmatpush3.bf16.msra.mxu1 %v2053_v3 }
 0x1df   : > { %v720_v49 = vpop.xlane.xlu0 %719 }
 0x1e0   : > { %v2798_v52 = vmax.f32 %v2795_v46, %v720_v49  ;;  %v2838_v49 = vld [vmem:[#allocation2 + $0x20] sm:$0xff] }
 0x1e2   : > { %1440 = vst.msk [vmem:[#allocation2] sm:$0xff] %vm1102_vm3, %v2798_v52  ;;  %832 = vperm.xlu0 %2148, %v2798_v52  }
 0x1e3   : > { %v723_v6 = vpop.xlane.xlu0 %722 }
 0x1e4   : > { %v2810_v7 = vmax.f32 %v2802_v61, %v723_v6  ;;  %v2848_v6 = vld [vmem:[#allocation2 + $0x28] sm:$0xff] }
 0x1e6   : > { %1441 = vst.msk [vmem:[#allocation2 + $0x8] sm:$0xff] %vm1102_vm3, %v2810_v7  ;;  %837 = vperm.xlu1 %2149, %v2810_v7   ;;  %v783_v0 = vsub.f32 %v2802_v61, %v2810_v7  ;;  %v2916_v7 = vld [vmem:[#allocation2 + $0x68] sm:$0xff] }
 0x1e7   : > { %v726_v15 = vpop.xlane.xlu1 %725 }
 0x1e8   : > { %v2822_v16 = vmax.f32 %v2814_v10, %v726_v15 }
 0x1ea   : > { %1442 = vst.msk [vmem:[#allocation2 + $0x10] sm:$0xff] %vm1102_vm3, %v2822_v16  ;;  %842 = vperm.xlu1 %2149, %v2822_v16  }
 0x1eb   : > { %v729_v34 = vpop.xlane.xlu1 %728 }
 0x1ec   : > { %v2834_v37 = vmax.f32 %v2826_v21, %v729_v34 }
 0x1ee   : > { %1443 = vst.msk [vmem:[#allocation2 + $0x18] sm:$0xff] %vm1102_vm3, %v2834_v37  ;;  %847 = vperm.xlu1 %2149, %v2834_v37  }
 0x1ef   : > { %v732_v4 = vpop.xlane.xlu0 %731 }
 0x1f0   : > { %v2846_v5 = vmax.f32 %v2838_v49, %v732_v4 }
 0x1f2   : > { %1444 = vst.msk [vmem:[#allocation2 + $0x20] sm:$0xff] %vm1102_vm3, %v2846_v5  ;;  %852 = vperm.xlu1 %2149, %v2846_v5  }
 0x1f3   : > { %v735_v8 = vpop.xlane.xlu1 %734 }
 0x1f4   : > { %v2854_v9 = vmax.f32 %v2848_v6, %v735_v8  ;;  %v2906_v8 = vld [vmem:[#allocation2 + $0x60] sm:$0xff] }
 0x1f6   : > { %1445 = vst.msk [vmem:[#allocation2 + $0x28] sm:$0xff] %vm1102_vm3, %v2854_v9  ;;  %857 = vperm.xlu1 %2149, %v2854_v9  }
 0x1f7   : > { %v738_v12 = vpop.xlane.xlu0 %737 }
 0x1f8   : > { %v2862_v13 = vmax.f32 %v2856_v11, %v738_v12  ;;  %v782_v12 = vsub.f32 %v2795_v46, %v2798_v52  ;;  %v786_v52 = vsub.f32 %v2838_v49, %v2846_v5  ;;  %v2934_v5 = vld [vmem:[#allocation2 + $0x78] sm:$0xff] }
 0x1fa   : > { %1446 = vst.msk [vmem:[#allocation2 + $0x30] sm:$0xff] %vm1102_vm3, %v2862_v13  ;;  %862 = vperm.xlu1 %2149, %v2862_v13  }
 0x1fb   : > { %v741_v15 = vpop.xlane.xlu1 %740 }
 0x1fc   : > { %v2870_v17 = vmax.f32 %v2864_v14, %v741_v15  ;;  %v800_v15 = vmul.f32 1.442695, %v783_v0 }
 0x1fe   : > { %1447 = vst.msk [vmem:[#allocation2 + $0x38] sm:$0xff] %vm1102_vm3, %v2870_v17  ;;  %867 = vperm.xlu1 %2149, %v2870_v17   ;;  %2150 = vpow2.f32 %v800_v15 }
 0x1ff   : > { %v744_v24 = vpop.xlane.xlu0 %743 }
 0x200   : > { %v2878_v27 = vmax.f32 %v2872_v18, %v744_v24  ;;  %v784_v24 = vsub.f32 %v2814_v10, %v2822_v16  ;;  %v2924_v16 = vld [vmem:[#allocation2 + $0x70] sm:$0xff] }
 0x202   : > { %1448 = vst.msk [vmem:[#allocation2 + $0x40] sm:$0xff] %vm1102_vm3, %v2878_v27  ;;  %872 = vperm.xlu1 %2149, %v2878_v27   ;;  %v802_v46 = vmul.f32 1.442695, %v784_v24 }
 0x203   : > { %v747_v33 = vpop.xlane.xlu1 %746 }
 0x204   : > { %v2886_v34 = vmax.f32 %v2880_v30, %v747_v33 }
 0x206   : > { %1449 = vst.msk [vmem:[#allocation2 + $0x48] sm:$0xff] %vm1102_vm3, %v2886_v34  ;;  %877 = vperm.xlu0 %2148, %v2886_v34  }
 0x207   : > { %v750_v43 = vpop.xlane.xlu0 %749 }
 0x208   : > { %v2894_v55 = vmax.f32 %v2888_v40, %v750_v43  ;;  %v798_v43 = vmul.f32 1.442695, %v782_v12  ;;  %v787_v12 = vsub.f32 %v2848_v6, %v2854_v9 }
 0x20a   : > { %1450 = vst.msk [vmem:[#allocation2 + $0x50] sm:$0xff] %vm1102_vm3, %v2894_v55  ;;  %882 = vperm.xlu1 %2149, %v2894_v55   ;;  %2152 = vpow2.f32 %v798_v43  ;;  %v808_v24 = vmul.f32 1.442695, %v787_v12  ;;  %v789_v43 = vsub.f32 %v2864_v14, %v2870_v17  ;;  %v791_v17 = vsub.f32 %v2880_v30, %v2886_v34 }
 0x20b   : > { %v753_v3 = vpop.xlane.xlu1 %752  ;;  %2154 = vpow2.f32 %v802_v46  ;;  %v2948_v46 = vpop.eup %2150 }
 0x20c   : > { %v2904_v4 = vmax.f32 %v2896_v58, %v753_v3  ;;  %v785_v3 = vsub.f32 %v2826_v21, %v2834_v37  ;;  %v806_v21 = vmul.f32 1.442695, %v786_v52  ;;  %v788_v37 = vsub.f32 %v2856_v11, %v2862_v13 }
 0x20d   : > { %v790_v11 = vsub.f32 %v2872_v18, %v2878_v27  ;;  %v812_v14 = vmul.f32 1.442695, %v789_v43  ;;  %v792_v27 = vsub.f32 %v2888_v40, %v2894_v55  ;;  %v816_v30 = vmul.f32 1.442695, %v791_v17 }
 0x20e   : > { %1451 = vst.msk [vmem:[#allocation2 + $0x58] sm:$0xff] %vm1102_vm3, %v2904_v4  ;;  %887 = vperm.xlu0 %2148, %v2904_v4   ;;  %v810_v9 = vmul.f32 1.442695, %v788_v37  ;;  %v793_v34 = vsub.f32 %v2896_v58, %v2904_v4 }
 0x20f   : > { %v756_v33 = vpop.xlane.xlu0 %755  ;;  %v814_v18 = vmul.f32 1.442695, %v790_v11  ;;  %v818_v12 = vmul.f32 1.442695, %v792_v27 }
 0x210   : > { %v778_v61 = vmax.f32 %v2906_v8, %v756_v33  ;;  %v804_v33 = vmul.f32 1.442695, %v785_v3  ;;  %v820_v55 = vmul.f32 1.442695, %v793_v34 }
 0x212   : > { %1452 = vst.msk [vmem:[#allocation2 + $0x60] sm:$0xff] %vm1102_vm3, %v778_v61  ;;  %892 = vperm.xlu1 %2149, %v778_v61   ;;  %2156 = vpow2.f32 %v804_v33 }
 0x213   : > { %v759_v0 = vpop.xlane.xlu1 %758  ;;  %2158 = vpow2.f32 %v806_v21  ;;  %v794_v21 = vsub.f32 %v2906_v8, %v778_v61 }
 0x214   : > { %v779_v10 = vmax.f32 %v2916_v7, %v759_v0  ;;  %2160 = vpow2.f32 %v808_v24  ;;  %v2960_v0 = vpop.eup %2152 }
 0x215   : > { %2162 = vpow2.f32 %v810_v9  ;;  %v2962_v33 = vpop.eup %2154  ;;  %v822_v58 = vmul.f32 1.442695, %v794_v21 }
 0x216   : > { %1453 = vst.msk [vmem:[#allocation2 + $0x68] sm:$0xff] %vm1102_vm3, %v779_v10  ;;  %897 = vperm.xlu0 %2148, %v779_v10   ;;  %2164 = vpow2.f32 %v812_v14  ;;  %v795_v4 = vsub.f32 %v2916_v7, %v779_v10 }
 0x217   : > { %v762_v15 = vpop.xlane.xlu0 %761  ;;  %2166 = vpow2.f32 %v814_v18 }
 0x218   : > { %v2932_v49 = vmax.f32 %v2924_v16, %v762_v15  ;;  %2168 = vpow2.f32 %v816_v30  ;;  %v824_v8 = vmul.f32 1.442695, %v795_v4 }
 0x219   : > { %2170 = vpow2.f32 %v818_v12 }
 0x21a   : > { %v796_v6 = vsub.f32 %v2924_v16, %v2932_v49  ;;  %1454 = vst.msk [vmem:[#allocation2 + $0x70] sm:$0xff] %vm1102_vm3, %v2932_v49  ;;  %902 = vperm.xlu1 %2149, %v2932_v49   ;;  %2172 = vpow2.f32 %v820_v55 }
 0x21b   : > { %v765_v13 = vpop.xlane.xlu1 %764  ;;  %2174 = vpow2.f32 %v822_v58 }
 0x21c   : > { %v2946_v3 = vmax.f32 %v2934_v5, %v765_v13  ;;  %v2969_v37 = vpop.eup %2156  ;;  %2176 = vpow2.f32 %v824_v8 }
 0x21d   : > { %v2971_v40 = vpop.eup %2158 }
 0x21e   : > { %1455 = vst.msk [vmem:[#allocation2 + $0x78] sm:$0xff] %vm1102_vm3, %v2946_v3  ;;  %1142 = vperm.xlu1 %2149, %v2948_v46   ;;  %907 = vperm.xlu0 %2148, %v2946_v3   ;;  %v2976_v15 = vpop.eup %2160 }
 0x21f   : > { %v2978_v24 = vpop.eup %2162 }
 0x220   : > { %v2982_v61 = vpop.eup %2164 }
 0x221   : > { %v2984_v43 = vpop.eup %2166 }
 0x222   : > { %1147 = vperm.xlu1 %2149, %v2962_v33   ;;  %1137 = vperm.xlu0 %2148, %v2960_v0   ;;  %v2988_v7 = vpop.eup %2168 }
 0x223   : > { %v2990_v10 = vpop.eup %2170 }
 0x224   : > { %v2994_v9 = vpop.eup %2172 }
 0x225   : > { %v2996_v11 = vpop.eup %2174 }
 0x226   : > { %1157 = vperm.xlu1 %2149, %v2971_v40   ;;  %1152 = vperm.xlu0 %2148, %v2969_v37   ;;  %v3000_v13 = vpop.eup %2176 }
 0x22a   : > { %1167 = vperm.xlu1 %2149, %v2978_v24   ;;  %1162 = vperm.xlu0 %2148, %v2976_v15  }
 0x22e   : > { %1177 = vperm.xlu1 %2149, %v2984_v43   ;;  %1172 = vperm.xlu0 %2148, %v2982_v61  }
 0x232   : > { %1187 = vperm.xlu1 %2149, %v2990_v10   ;;  %1182 = vperm.xlu0 %2148, %v2988_v7  }
 0x236   : > { %1197 = vperm.xlu1 %2149, %v2996_v11   ;;  %1192 = vperm.xlu0 %2148, %v2994_v9  }
 0x23a   : > { %1202 = vperm.xlu0 %2148, %v3000_v13  }
 0x261   : > { %v833_v14 = vpop.permute.xlu0 %832 }
 0x262   : > { %v910_v17 = vsub.f32 %v2683_v19, %v833_v14  ;;  %v911_v18 = vsub.f32 %v2685_v20, %v833_v14 }
 0x264   : > { %v942_v27 = vmul.f32 1.442695, %v910_v17  ;;  %v944_v30 = vmul.f32 1.442695, %v911_v18 }
 0x265   : > { %v838_v34 = vpop.permute.xlu1 %837 }
 0x266   : > { %2178 = vpow2.f32 %v942_v27  ;;  %v912_v12 = vsub.f32 %v2689_v22, %v838_v34  ;;  %v913_v21 = vsub.f32 %v2691_v23, %v838_v34 }
 0x267   : > { %2180 = vpow2.f32 %v944_v30 }
 0x268   : > { %v946_v55 = vmul.f32 1.442695, %v912_v12  ;;  %v948_v58 = vmul.f32 1.442695, %v913_v21 }
 0x269   : > { %v843_v4 = vpop.permute.xlu1 %842 }
 0x26a   : > { %2182 = vpow2.f32 %v946_v55  ;;  %v914_v8 = vsub.f32 %v2695_v25, %v843_v4  ;;  %v915_v52 = vsub.f32 %v2697_v26, %v843_v4 }
 0x26b   : > { %2184 = vpow2.f32 %v948_v58 }
 0x26c   : > { %v950_v19 = vmul.f32 1.442695, %v914_v8  ;;  %v952_v20 = vmul.f32 1.442695, %v915_v52 }
 0x26d   : > { %v848_v14 = vpop.permute.xlu1 %847 }
 0x26e   : > { %2186 = vpow2.f32 %v950_v19  ;;  %v916_v17 = vsub.f32 %v2701_v28, %v848_v14  ;;  %v917_v22 = vsub.f32 %v2703_v29, %v848_v14 }
 0x26f   : > { %2188 = vpow2.f32 %v952_v20 }
 0x270   : > { %v2179_v23 = vpop.eup %2178  ;;  %v954_v18 = vmul.f32 1.442695, %v916_v17  ;;  %v956_v27 = vmul.f32 1.442695, %v917_v22 }
 0x271   : > { %v2181_v30 = vpop.eup %2180  ;;  %v853_v34 = vpop.permute.xlu1 %852 }
 0x272   : > { %2190 = vpow2.f32 %v954_v18  ;;  %1327 = vmatprep.mubr.f32.mxu1 %v2181_v30  ;;  %v918_v25 = vsub.f32 %v2707_v31, %v853_v34  ;;  %v919_v26 = vsub.f32 %v2709_v32, %v853_v34  ;;  %v1038_v12 = vadd.f32 %v2181_v30, %v2179_v23 }
 0x273   : > { %2192 = vpow2.f32 %v956_v27  ;;  %1328 = vmatmul.mubr.f32.vlgmr.msra.gmra.mrb[0].mxu1 %v2179_v23 }
 0x274   : > { %v2183_v52 = vpop.eup %2182  ;;  %v958_v21 = vmul.f32 1.442695, %v918_v25  ;;  %v960_v28 = vmul.f32 1.442695, %v919_v26  ;;  %1039 = vadd.xlane.f32.xlu1 %v1038_v12 }
 0x275   : > { %v2185_v29 = vpop.eup %2184  ;;  %v858_v55 = vpop.permute.xlu1 %857 }
 0x276   : > { %2194 = vpow2.f32 %v958_v21  ;;  %1332 = vmatprep.mubr.f32.mxu1 %v2185_v29  ;;  %v920_v58 = vsub.f32 %v2713_v35, %v858_v55  ;;  %v921_v4 = vsub.f32 %v2715_v36, %v858_v55  ;;  %v1041_v8 = vadd.f32 %v2185_v29, %v2183_v52 }
 0x277   : > { %2196 = vpow2.f32 %v960_v28  ;;  %1333 = vmatmul.mubr.f32.gmra.mrb[2].mxu1 %v2183_v52 }
 0x278   : > { %v2187_v31 = vpop.eup %2186  ;;  %v962_v32 = vmul.f32 1.442695, %v920_v58  ;;  %v964_v19 = vmul.f32 1.442695, %v921_v4  ;;  %1042 = vadd.xlane.f32.xlu0 %v1041_v8 }
 0x279   : > { %v2189_v20 = vpop.eup %2188  ;;  %v863_v14 = vpop.permute.xlu1 %862 }
 0x27a   : > { %2198 = vpow2.f32 %v962_v32  ;;  %1337 = vmatprep.mubr.f32.mxu1 %v2189_v20  ;;  %v922_v17 = vsub.f32 %v2719_v38, %v863_v14  ;;  %v923_v22 = vsub.f32 %v2721_v39, %v863_v14  ;;  %v1044_v23 = vadd.f32 %v2189_v20, %v2187_v31 }
 0x27b   : > { %2200 = vpow2.f32 %v964_v19  ;;  %1338 = vmatmul.mubr.f32.gmra.mrb[4].mxu1 %v2187_v31 }
 0x27c   : > { %v2191_v35 = vpop.eup %2190  ;;  %v966_v36 = vmul.f32 1.442695, %v922_v17  ;;  %v968_v18 = vmul.f32 1.442695, %v923_v22  ;;  %1045 = vadd.xlane.f32.xlu0 %v1044_v23 }
 0x27d   : > { %v2193_v27 = vpop.eup %2192  ;;  %v868_v30 = vpop.permute.xlu1 %867 }
 0x27e   : > { %2202 = vpow2.f32 %v966_v36  ;;  %1342 = vmatprep.mubr.f32.mxu1 %v2193_v27  ;;  %v924_v34 = vsub.f32 %v2725_v41, %v868_v30  ;;  %v925_v25 = vsub.f32 %v2727_v42, %v868_v30  ;;  %v1047_v26 = vadd.f32 %v2193_v27, %v2191_v35 }
 0x27f   : > { %2204 = vpow2.f32 %v968_v18  ;;  %1343 = vmatmul.mubr.f32.gmra.mrb[6].mxu1 %v2191_v35 }
 0x280   : > { %v2195_v38 = vpop.eup %2194  ;;  %v970_v39 = vmul.f32 1.442695, %v924_v34  ;;  %v972_v12 = vmul.f32 1.442695, %v925_v25  ;;  %1048 = vadd.xlane.f32.xlu1 %v1047_v26 }
 0x281   : > { %v2197_v52 = vpop.eup %2196  ;;  %v873_v21 = vpop.permute.xlu1 %872 }
 0x282   : > { %2206 = vpow2.f32 %v970_v39  ;;  %1347 = vmatprep.mubr.f32.mxu1 %v2197_v52  ;;  %v926_v28 = vsub.f32 %v2731_v44, %v873_v21  ;;  %v927_v29 = vsub.f32 %v2733_v45, %v873_v21  ;;  %v1050_v55 = vadd.f32 %v2197_v52, %v2195_v38 }
 0x283   : > { %2208 = vpow2.f32 %v972_v12  ;;  %1348 = vmatmul.mubr.f32.gmra.mrb[8].mxu1 %v2195_v38 }
 0x284   : > { %v2199_v41 = vpop.eup %2198  ;;  %v974_v42 = vmul.f32 1.442695, %v926_v28  ;;  %v976_v58 = vmul.f32 1.442695, %v927_v29  ;;  %1051 = vadd.xlane.f32.xlu0 %v1050_v55 }
 0x285   : > { %v2201_v4 = vpop.eup %2200  ;;  %v878_v8 = vpop.permute.xlu0 %877 }
 0x286   : > { %2210 = vpow2.f32 %v974_v42  ;;  %v928_v31 = vsub.f32 %v2737_v47, %v878_v8  ;;  %v929_v32 = vsub.f32 %v2739_v48, %v878_v8  ;;  %1352 = vmatprep.mubr.f32.mxu1 %v2201_v4  ;;  %v1053_v19 = vadd.f32 %v2201_v4, %v2199_v41 }
 0x287   : > { %2212 = vpow2.f32 %v976_v58  ;;  %1353 = vmatmul.mubr.f32.gmra.mrb[10].mxu1 %v2199_v41 }
 0x288   : > { %v2203_v44 = vpop.eup %2202  ;;  %v978_v45 = vmul.f32 1.442695, %v928_v31  ;;  %v980_v20 = vmul.f32 1.442695, %v929_v32  ;;  %1054 = vadd.xlane.f32.xlu1 %v1053_v19 }
 0x289   : > { %v2205_v14 = vpop.eup %2204  ;;  %v883_v17 = vpop.permute.xlu1 %882 }
 0x28a   : > { %2214 = vpow2.f32 %v978_v45  ;;  %1357 = vmatprep.mubr.f32.mxu1 %v2205_v14  ;;  %v930_v22 = vsub.f32 %v2743_v50, %v883_v17  ;;  %v931_v23 = vsub.f32 %v2745_v51, %v883_v17  ;;  %v1056_v35 = vadd.f32 %v2205_v14, %v2203_v44 }
 0x28b   : > { %2216 = vpow2.f32 %v980_v20  ;;  %1358 = vmatmul.mubr.f32.gmra.mrb[12].mxu1 %v2203_v44 }
 0x28c   : > { %v2207_v47 = vpop.eup %2206  ;;  %v982_v48 = vmul.f32 1.442695, %v930_v22  ;;  %v984_v36 = vmul.f32 1.442695, %v931_v23  ;;  %1057 = vadd.xlane.f32.xlu0 %v1056_v35 }
 0x28d   : > { %v2209_v18 = vpop.eup %2208  ;;  %v888_v27 = vpop.permute.xlu0 %887 }
 0x28e   : > { %2218 = vpow2.f32 %v982_v48  ;;  %v932_v30 = vsub.f32 %v2749_v53, %v888_v27  ;;  %v933_v34 = vsub.f32 %v2751_v54, %v888_v27  ;;  %1362 = vmatprep.mubr.f32.mxu1 %v2209_v18  ;;  %v1059_v25 = vadd.f32 %v2209_v18, %v2207_v47 }
 0x28f   : > { %2220 = vpow2.f32 %v984_v36  ;;  %1363 = vmatmul.mubr.f32.gmra.mrb[14].mxu1 %v2207_v47 }
 0x290   : > { %v2211_v50 = vpop.eup %2210  ;;  %v986_v51 = vmul.f32 1.442695, %v932_v30  ;;  %v988_v26 = vmul.f32 1.442695, %v933_v34  ;;  %1060 = vadd.xlane.f32.xlu1 %v1059_v25 }
 0x291   : > { %v2213_v38 = vpop.eup %2212  ;;  %v893_v39 = vpop.permute.xlu1 %892 }
 0x292   : > { %2222 = vpow2.f32 %v986_v51  ;;  %1367 = vmatprep.mubr.f32.mxu1 %v2213_v38  ;;  %v934_v12 = vsub.f32 %v2755_v56, %v893_v39  ;;  %v935_v52 = vsub.f32 %v2757_v57, %v893_v39  ;;  %v1062_v21 = vadd.f32 %v2213_v38, %v2211_v50 }
 0x293   : > { %2224 = vpow2.f32 %v988_v26  ;;  %1368 = vmatmul.mubr.f32.gmra.mrb[16].mxu1 %v2211_v50  ;;  %v826_v51 = vmul.f32 1.442695, %v796_v6  ;;  %v3229_v26 = vsub.f32 %v2934_v5, %v2946_v3 }
 0x294   : > { %v2215_v53 = vpop.eup %2214  ;;  %v990_v54 = vmul.f32 1.442695, %v934_v12  ;;  %v992_v28 = vmul.f32 1.442695, %v935_v52  ;;  %1063 = vadd.xlane.f32.xlu0 %v1062_v21 }
 0x295   : > { %v2217_v29 = vpop.eup %2216  ;;  %v898_v55 = vpop.permute.xlu0 %897  ;;  %v828_v38 = vmul.f32 1.442695, %v3229_v26  ;;  %v1016_v26 = vld [vmem:[#allocation3 + $0x50] sm:$0xff] }
 0x296   : > { %2226 = vpow2.f32 %v990_v54  ;;  %v936_v41 = vsub.f32 %v2761_v59, %v898_v55  ;;  %v937_v42 = vsub.f32 %v2763_v60, %v898_v55  ;;  %1372 = vmatprep.mubr.f32.mxu1 %v2217_v29  ;;  %v1065_v58 = vadd.f32 %v2217_v29, %v2215_v53 }
 0x297   : > { %2228 = vpow2.f32 %v992_v28  ;;  %1373 = vmatmul.mubr.f32.gmra.mrb[18].mxu1 %v2215_v53 }
 0x298   : > { %v2219_v56 = vpop.eup %2218  ;;  %v994_v57 = vmul.f32 1.442695, %v936_v41  ;;  %v996_v4 = vmul.f32 1.442695, %v937_v42  ;;  %1066 = vadd.xlane.f32.xlu1 %v1065_v58  ;;  %v1006_v42 = vld [vmem:[#allocation3] sm:$0xff] }
 0x299   : > { %v2221_v8 = vpop.eup %2220  ;;  %v903_v31 = vpop.permute.xlu1 %902  ;;  %v1022_v58 = vmul.f32 %v2960_v0, %v1006_v42 }
 0x29a   : > { %2230 = vpow2.f32 %v994_v57  ;;  %1377 = vmatprep.mubr.f32.mxu1 %v2221_v8  ;;  %v938_v32 = vsub.f32 %v2767_v62, %v903_v31  ;;  %v939_v19 = vsub.f32 %v2769_v63, %v903_v31  ;;  %v1068_v44 = vadd.f32 %v2221_v8, %v2219_v56 }
 0x29b   : > { %2232 = vpow2.f32 %v996_v4  ;;  %1378 = vmatmul.mubr.f32.gmra.mrb[20].mxu1 %v2219_v56  ;;  %v1007_v4 = vld [vmem:[#allocation3 + $0x8] sm:$0xff] }
 0x29c   : > { %v2223_v59 = vpop.eup %2222  ;;  %v998_v60 = vmul.f32 1.442695, %v938_v32  ;;  %v1000_v45 = vmul.f32 1.442695, %v939_v19  ;;  %1069 = vadd.xlane.f32.xlu0 %v1068_v44  ;;  %v1023_v31 = vmul.f32 %v2948_v46, %v1007_v4  ;;  %v1008_v19 = vld [vmem:[#allocation3 + $0x10] sm:$0xff]  ;;  %v1018_v4 = vld [vmem:[#allocation3 + $0x60] sm:$0xff] }
 0x29d   : > { %v2225_v20 = vpop.eup %2224  ;;  %v908_v14 = vpop.permute.xlu0 %907 }
 0x29e   : > { %2234 = vpow2.f32 %v998_v60  ;;  %v940_v17 = vsub.f32 %v2773_v1, %v908_v14  ;;  %v941_v22 = vsub.f32 %v2775_v2, %v908_v14  ;;  %1382 = vmatprep.mubr.f32.mxu1 %v2225_v20  ;;  %v1071_v62 = vadd.f32 %v2225_v20, %v2223_v59  ;;  %v3047_v52 = vpop.permute.xlu1 %1142 }
 0x29f   : > { %2236 = vpow2.f32 %v1000_v45  ;;  %1383 = vmatmul.mubr.f32.gmra.mrb[22].mxu1 %v2223_v59  ;;  %v1024_v59 = vmul.f32 %v2962_v33, %v1008_v19  ;;  %v1009_v45 = vld [vmem:[#allocation3 + $0x18] sm:$0xff]  ;;  %v1019_v19 = vld [vmem:[#allocation3 + $0x68] sm:$0xff] }
 0x2a0   : > { %v2227_v23 = vpop.eup %2226  ;;  %v1002_v63 = vmul.f32 1.442695, %v940_v17  ;;  %v1004_v35 = vmul.f32 1.442695, %v941_v22  ;;  %1072 = vadd.xlane.f32.xlu1 %v1071_v62  ;;  %v1025_v0 = vmul.f32 %v2969_v37, %v1009_v45  ;;  %v1010_v17 = vld [vmem:[#allocation3 + $0x20] sm:$0xff] }
 0x2a1   : > { %v2229_v47 = vpop.eup %2228  ;;  %v3049_v21 = vpop.permute.xlu0 %1137  ;;  %v1026_v46 = vmul.f32 %v2971_v40, %v1010_v17 }
 0x2a2   : > { %2238 = vpow2.f32 %v1002_v63  ;;  %1387 = vmatprep.mubr.f32.mxu1 %v2229_v47  ;;  %v1074_v48 = vadd.f32 %v2229_v47, %v2227_v23  ;;  %v3051_v16 = vpop.permute.xlu1 %1147  ;;  %v1012_v47 = vld [vmem:[#allocation3 + $0x30] sm:$0xff] }
 0x2a3   : > { %2240 = vpow2.f32 %v1004_v35  ;;  %1388 = vmatmul.mubr.f32.gmra.mrb[24].mxu1 %v2227_v23  ;;  %v1011_v23 = vld [vmem:[#allocation3 + $0x28] sm:$0xff]  ;;  %v1028_v37 = vmul.f32 %v2978_v24, %v1012_v47 }
 0x2a4   : > { %v2231_v36 = vpop.eup %2230  ;;  %1075 = vadd.xlane.f32.xlu0 %v1074_v48  ;;  %2242 = vpow2.f32 %v826_v51  ;;  %v1027_v33 = vmul.f32 %v2976_v15, %v1011_v23 }
 0x2a5   : > { %v2233_v18 = vpop.eup %2232  ;;  %2244 = vpow2.f32 %v828_v38  ;;  %v3053_v49 = vpop.permute.xlu0 %1152 }
 0x2a6   : > { %1392 = vmatprep.mubr.f32.mxu1 %v2233_v18  ;;  %v1077_v1 = vadd.f32 %v2233_v18, %v2231_v36  ;;  %v3055_v5 = vpop.permute.xlu1 %1157  ;;  %v1013_v18 = vld [vmem:[#allocation3 + $0x38] sm:$0xff] }
 0x2a7   : > { %1393 = vmatmul.mubr.f32.gmra.mrb[26].mxu1 %v2231_v36  ;;  %v1029_v40 = vmul.f32 %v2982_v61, %v1013_v18  ;;  %v1032_v61 = vmul.f32 %v2990_v10, %v1016_v26  ;;  %v1035_v10 = vmul.f32 %v3000_v13, %v1019_v19  ;;  %v1126_v19 = vld [vmem:[#allocation4 + $0x38] sm:$0xff] }
 0x2a8   : > { %v2235_v2 = vpop.eup %2234  ;;  %1078 = vadd.xlane.f32.xlu1 %v1077_v1 }
 0x2a9   : > { %v2237_v27 = vpop.eup %2236  ;;  %v3057_v6 = vpop.permute.xlu0 %1162 }
 0x2aa   : > { %1397 = vmatprep.mubr.f32.mxu1 %v2237_v27  ;;  %v1080_v30 = vadd.f32 %v2237_v27, %v2235_v2  ;;  %v3059_v3 = vpop.permute.xlu1 %1167  ;;  %v1014_v27 = vld [vmem:[#allocation3 + $0x40] sm:$0xff] }
 0x2ab   : > { %1398 = vmatmul.mubr.f32.gmra.mrb[28].mxu1 %v2235_v2  ;;  %v1030_v15 = vmul.f32 %v2984_v43, %v1014_v27  ;;  %v1122_v27 = vld [vmem:[#allocation4 + $0x18] sm:$0xff] }
 0x2ac   : > { %v2239_v34 = vpop.eup %2238  ;;  %1081 = vadd.xlane.f32.xlu0 %v1080_v30 }
 0x2ad   : > { %v2241_v25 = vpop.eup %2240  ;;  %v3061_v53 = vpop.permute.xlu0 %1172 }
 0x2ae   : > { %1402 = vmatprep.mubr.f32.mxu1 %v2241_v25  ;;  %v1083_v50 = vadd.f32 %v2241_v25, %v2239_v34  ;;  %v3041_v39 = vpop.eup %2242  ;;  %v3063_v54 = vpop.permute.xlu1 %1177  ;;  %v1015_v25 = vld [vmem:[#allocation3 + $0x48] sm:$0xff] }
 0x2af   : > { %1403 = vmatmul.mubr.f32.gmra.mrb[30].mxu1 %v2239_v34  ;;  %v3043_v12 = vpop.eup %2244  ;;  %v1031_v24 = vmul.f32 %v2988_v7, %v1015_v25 }
 0x2b0   : > { %1084 = vadd.xlane.f32.xlu1 %v1083_v50 }
 0x2b1   : > { %v3065_v28 = vpop.permute.xlu0 %1182 }
 0x2b2   : > { %v3067_v29 = vpop.permute.xlu1 %1187 }
 0x2b5   : > { %v3069_v55 = vpop.permute.xlu0 %1192 }
 0x2b6   : > { %v3071_v41 = vpop.permute.xlu1 %1197 }
 0x2b9   : > { %v3074_v56 = vpop.permute.xlu0 %1202 }
 0x2c1   : > { %1207 = vperm.xlu1 %2149, %v3041_v39  }
 0x2c2   : > { %1212 = vperm.xlu0 %2148, %v3043_v12  }
 0x301   : > { %v1040_v57 = vpop.xlane.xlu1 %1039 }
 0x302   : > { %v1086_v8 = vadd.f32 %v1040_v57, %v1022_v58  ;;  %v1017_v57 = vld [vmem:[#allocation3 + $0x58] sm:$0xff] }
 0x303   : > { %v1033_v43 = vmul.f32 %v2994_v9, %v1017_v57 }
 0x304   : > { %1103 = vst.msk [vmem:[#allocation3] sm:$0xff] %vm1102_vm3, %v1086_v8 }
 0x305   : > { %v1043_v32 = vpop.xlane.xlu0 %1042 }
 0x306   : > { %v1087_v44 = vadd.f32 %v1043_v32, %v1023_v31  ;;  %v1034_v32 = vmul.f32 %v2996_v11, %v1018_v4  ;;  %v1125_v4 = vld [vmem:[#allocation4 + $0x30] sm:$0xff] }
 0x308   : > { %1104 = vst.msk [vmem:[#allocation3 + $0x8] sm:$0xff] %vm1102_vm3, %v1087_v44 }
 0x309   : > { %v1046_v60 = vpop.xlane.xlu0 %1045 }
 0x30a   : > { %v1088_v20 = vadd.f32 %v1046_v60, %v1024_v59  ;;  %v1020_v60 = vld [vmem:[#allocation3 + $0x70] sm:$0xff] }
 0x30b   : > { %v1036_v9 = vmul.f32 %v3041_v39, %v1020_v60 }
 0x30c   : > { %1105 = vst.msk [vmem:[#allocation3 + $0x10] sm:$0xff] %vm1102_vm3, %v1088_v20 }
 0x30d   : > { %v1049_v14 = vpop.xlane.xlu1 %1048 }
 0x30e   : > { %v1089_v22 = vadd.f32 %v1049_v14, %v1025_v0  ;;  %v1021_v0 = vld [vmem:[#allocation3 + $0x78] sm:$0xff] }
 0x30f   : > { %v1037_v11 = vmul.f32 %v3043_v12, %v1021_v0 }
 0x310   : > { %1106 = vst.msk [vmem:[#allocation3 + $0x18] sm:$0xff] %vm1102_vm3, %v1089_v22 }
 0x311   : > { %v1052_v62 = vpop.xlane.xlu0 %1051 }
 0x312   : > { %v1090_v63 = vadd.f32 %v1052_v62, %v1026_v46  ;;  %v1119_v46 = vld [vmem:[#allocation4] sm:$0xff] }
 0x313   : > { %v1215_v23 = vmul.f32 %v3049_v21, %v1119_v46 }
 0x314   : > { %1107 = vst.msk [vmem:[#allocation3 + $0x20] sm:$0xff] %vm1102_vm3, %v1090_v63 }
 0x315   : > { %v1055_v35 = vpop.xlane.xlu1 %1054 }
 0x316   : > { %v1091_v48 = vadd.f32 %v1055_v35, %v1027_v33  ;;  %v1120_v33 = vld [vmem:[#allocation4 + $0x8] sm:$0xff] }
 0x318   : > { %1108 = vst.msk [vmem:[#allocation3 + $0x28] sm:$0xff] %vm1102_vm3, %v1091_v48  ;;  %v1216_v48 = vmul.f32 %v3047_v52, %v1120_v33 }
 0x319   : > { %v1058_v36 = vpop.xlane.xlu0 %1057 }
 0x31a   : > { %v1092_v1 = vadd.f32 %v1058_v36, %v1028_v37  ;;  %v1121_v36 = vld [vmem:[#allocation4 + $0x10] sm:$0xff] }
 0x31c   : > { %1109 = vst.msk [vmem:[#allocation3 + $0x30] sm:$0xff] %vm1102_vm3, %v1092_v1 }
 0x31d   : > { %v1061_v2 = vpop.xlane.xlu1 %1060 }
 0x31e   : > { %v1093_v30 = vadd.f32 %v1061_v2, %v1029_v40  ;;  %v1217_v40 = vmul.f32 %v3051_v16, %v1121_v36 }
 0x320   : > { %1110 = vst.msk [vmem:[#allocation3 + $0x38] sm:$0xff] %vm1102_vm3, %v1093_v30 }
 0x321   : > { %v1064_v34 = vpop.xlane.xlu0 %1063 }
 0x322   : > { %v1094_v50 = vadd.f32 %v1064_v34, %v1030_v15  ;;  %v1218_v34 = vmul.f32 %v3053_v49, %v1122_v27  ;;  %v1132_v27 = vld [vmem:[#allocation4 + $0x68] sm:$0xff] }
 0x324   : > { %1111 = vst.msk [vmem:[#allocation3 + $0x40] sm:$0xff] %vm1102_vm3, %v1094_v50  ;;  %v1123_v50 = vld [vmem:[#allocation4 + $0x20] sm:$0xff] }
 0x325   : > { %v1067_v51 = vpop.xlane.xlu1 %1066  ;;  %v1219_v26 = vmul.f32 %v3055_v5, %v1123_v50 }
 0x326   : > { %v1095_v38 = vadd.f32 %v1067_v51, %v1031_v24 }
 0x328   : > { %1112 = vst.msk [vmem:[#allocation3 + $0x48] sm:$0xff] %vm1102_vm3, %v1095_v38 }
 0x329   : > { %v1070_v42 = vpop.xlane.xlu0 %1069 }
 0x32a   : > { %v1096_v58 = vadd.f32 %v1070_v42, %v1032_v61  ;;  %v1124_v61 = vld [vmem:[#allocation4 + $0x28] sm:$0xff] }
 0x32b   : > { %v1220_v57 = vmul.f32 %v3057_v6, %v1124_v61 }
 0x32c   : > { %1113 = vst.msk [vmem:[#allocation3 + $0x50] sm:$0xff] %vm1102_vm3, %v1096_v58 }
 0x32d   : > { %v1073_v8 = vpop.xlane.xlu1 %1072 }
 0x32e   : > { %v1097_v31 = vadd.f32 %v1073_v8, %v1033_v43 }
 0x330   : > { %1114 = vst.msk [vmem:[#allocation3 + $0x58] sm:$0xff] %vm1102_vm3, %v1097_v31 }
 0x331   : > { %v1076_v7 = vpop.xlane.xlu0 %1075 }
 0x332   : > { %v1098_v44 = vadd.f32 %v1076_v7, %v1034_v32  ;;  %v1221_v32 = vmul.f32 %v3059_v3, %v1125_v4  ;;  %v1476_v4 = vld [vmem:[#allocation3] sm:$0xff] (!%p1824_p3) }
 0x334   : > { %1115 = vst.msk [vmem:[#allocation3 + $0x60] sm:$0xff] %vm1102_vm3, %v1098_v44 }
 0x335   : > { %v1079_v59 = vpop.xlane.xlu1 %1078 }
 0x336   : > { %v1099_v45 = vadd.f32 %v1079_v59, %v1035_v10  ;;  %v1222_v59 = vmul.f32 %v3061_v53, %v1126_v19  ;;  %v1483_v19 = vld [vmem:[#allocation3 + $0x38] sm:$0xff] (!%p1824_p3) }
 0x338   : > { %1116 = vst.msk [vmem:[#allocation3 + $0x68] sm:$0xff] %vm1102_vm3, %v1099_v45  ;;  %v1127_v45 = vld [vmem:[#allocation4 + $0x40] sm:$0xff] }
 0x339   : > { %v1082_v20 = vpop.xlane.xlu0 %1081  ;;  %v1223_v0 = vmul.f32 %v3063_v54, %v1127_v45  ;;  %v1484_v45 = vld [vmem:[#allocation3 + $0x40] sm:$0xff] (!%p1824_p3) }
 0x33a   : > { %v1100_v14 = vadd.f32 %v1082_v20, %v1036_v9 }
 0x33c   : > { %1117 = vst.msk [vmem:[#allocation3 + $0x70] sm:$0xff] %vm1102_vm3, %v1100_v14 }
 0x33d   : > { %v1085_v17 = vpop.xlane.xlu1 %1084 }
 0x33e   : > { %v1101_v22 = vadd.f32 %v1085_v17, %v1037_v11  ;;  %v1128_v11 = vld [vmem:[#allocation4 + $0x48] sm:$0xff] }
 0x33f   : > { %v1224_v46 = vmul.f32 %v3065_v28, %v1128_v11  ;;  %v1489_v11 = vld [vmem:[#allocation3 + $0x68] sm:$0xff] (!%p1824_p3) }
 0x340   : > { %1118 = vst.msk [vmem:[#allocation3 + $0x78] sm:$0xff] %vm1102_vm3, %v1101_v22 }
 0x346   : > { %v1927_v13 = vpop.f32.mrb[0].mxu1 }
 0x347   : > { %v1928_v62 = vpop.f32.mrb[1].mxu1 }
 0x348   : > { %v1929_v63 = vadd.f32 %v1928_v62, %v1927_v13  ;;  %v1129_v62 = vld [vmem:[#allocation4 + $0x50] sm:$0xff] }
 0x349   : > { %v1225_v33 = vmul.f32 %v3067_v29, %v1129_v62  ;;  %v1490_v62 = vld [vmem:[#allocation3 + $0x70] sm:$0xff] (!%p1824_p3) }
 0x34a   : > { %v1408_v35 = vadd.f32 %v1929_v63, %v1215_v23  ;;  %v1930_v39 = vpop.f32.mrb[2].mxu1 }
 0x34b   : > { %v1931_v47 = vpop.f32.mrb[3].mxu1 }
 0x34c   : > { %1424 = vst [vmem:[#allocation4] sm:$0xff] %v1408_v35  ;;  %v1932_v37 = vadd.f32 %v1931_v47, %v1930_v39  ;;  %v1130_v39 = vld [vmem:[#allocation4 + $0x58] sm:$0xff] }
 0x34e   : > { %v1409_v12 = vadd.f32 %v1932_v37, %v1216_v48  ;;  %v1933_v18 = vpop.f32.mrb[4].mxu1  ;;  %v1226_v37 = vmul.f32 %v3069_v55, %v1130_v39  ;;  %v1208_v55 = vpop.permute.xlu1 %1207 }
 0x34f   : > { %v1934_v1 = vpop.f32.mrb[5].mxu1 }
 0x350   : > { %1425 = vst [vmem:[#allocation4 + $0x8] sm:$0xff] %v1409_v12  ;;  %v1935_v2 = vadd.f32 %v1934_v1, %v1933_v18  ;;  %v1131_v12 = vld [vmem:[#allocation4 + $0x60] sm:$0xff] }
 0x352   : > { %v1410_v30 = vadd.f32 %v1935_v2, %v1217_v40  ;;  %v1936_v21 = vpop.f32.mrb[6].mxu1  ;;  %v1227_v40 = vmul.f32 %v3071_v41, %v1131_v12  ;;  %v1213_v41 = vpop.permute.xlu0 %1212 }
 0x353   : > { %v1937_v15 = vpop.f32.mrb[7].mxu1 }
 0x354   : > { %1426 = vst [vmem:[#allocation4 + $0x10] sm:$0xff] %v1410_v30  ;;  %v1938_v25 = vadd.f32 %v1937_v15, %v1936_v21  ;;  %v1228_v15 = vmul.f32 %v3074_v56, %v1132_v27  ;;  %v1478_v56 = vld [vmem:[#allocation3 + $0x10] sm:$0xff] (!%p1824_p3) }
 0x355   : > { %2248 = vrcp.f32 (!%p1824_p3), %v1478_v56 }
 0x356   : > { %v1411_v52 = vadd.f32 %v1938_v25, %v1218_v34  ;;  %v1939_v24 = vpop.f32.mrb[8].mxu1  ;;  %v1133_v25 = vld [vmem:[#allocation4 + $0x70] sm:$0xff]  ;;  %2250 = vrcp.f32 (!%p1824_p3), %v1476_v4 }
 0x357   : > { %v1940_v51 = vpop.f32.mrb[9].mxu1 }
 0x358   : > { %1427 = vst [vmem:[#allocation4 + $0x18] sm:$0xff] %v1411_v52  ;;  %v1941_v38 = vadd.f32 %v1940_v51, %v1939_v24  ;;  %v1229_v51 = vmul.f32 %v1208_v55, %v1133_v25 }
 0x35a   : > { %v1412_v16 = vadd.f32 %v1941_v38, %v1219_v26  ;;  %v1942_v42 = vpop.f32.mrb[10].mxu1  ;;  %v1134_v38 = vld [vmem:[#allocation4 + $0x78] sm:$0xff] }
 0x35b   : > { %v1943_v58 = vpop.f32.mrb[11].mxu1 }
 0x35c   : > { %1428 = vst [vmem:[#allocation4 + $0x20] sm:$0xff] %v1412_v16  ;;  %v1944_v43 = vadd.f32 %v1943_v58, %v1942_v42  ;;  %v1230_v58 = vmul.f32 %v1213_v41, %v1134_v38 }
 0x35e   : > { %v1413_v49 = vadd.f32 %v1944_v43, %v1220_v57  ;;  %v1945_v8 = vpop.f32.mrb[12].mxu1 }
 0x35f   : > { %v1946_v31 = vpop.f32.mrb[13].mxu1 }
 0x360   : > { %1429 = vst [vmem:[#allocation4 + $0x28] sm:$0xff] %v1413_v49  ;;  %v1947_v7 = vadd.f32 %v1946_v31, %v1945_v8  ;;  %v1479_v49 = vld [vmem:[#allocation3 + $0x18] sm:$0xff] (!%p1824_p3)  ;;  %v2395_v8 = vmov (!%p1824_p3), 0   ;;  %v1477_v31 = vld [vmem:[#allocation3 + $0x8] sm:$0xff] (!%p1824_p3) }
 0x361   : > { %2247 = vset.pattern.permute.xlu1 (!%p1824_p3), %v2395_v8  ;;  %2246 = vset.pattern.permute.xlu0 (!%p1824_p3), %v2395_v8  ;;  %2252 = vrcp.f32 (!%p1824_p3), %v1479_v49 }
 0x362   : > { %v1414_v5 = vadd.f32 %v1947_v7, %v1221_v32  ;;  %v1948_v44 = vpop.f32.mrb[14].mxu1  ;;  %2254 = vrcp.f32 (!%p1824_p3), %v1477_v31  ;;  %v1481_v32 = vld [vmem:[#allocation3 + $0x28] sm:$0xff] (!%p1824_p3)  ;;  %v1480_v7 = vld [vmem:[#allocation3 + $0x20] sm:$0xff] (!%p1824_p3) }
 0x363   : > { %v1949_v10 = vpop.f32.mrb[15].mxu1  ;;  %2256 = vrcp.f32 (!%p1824_p3), %v1481_v32 }
 0x364   : > { %1430 = vst [vmem:[#allocation4 + $0x30] sm:$0xff] %v1414_v5  ;;  %v1950_v60 = vadd.f32 %v1949_v10, %v1948_v44  ;;  %2258 = vrcp.f32 (!%p1824_p3), %v1480_v7  ;;  %v1482_v5 = vld [vmem:[#allocation3 + $0x30] sm:$0xff] (!%p1824_p3)  ;;  %v2249_v44 = vpop.eup (!%p1824_p3), %2248 }
 0x365   : > { %2260 = vrcp.f32 (!%p1824_p3), %v1483_v19  ;;  %v2251_v10 = vpop.eup (!%p1824_p3), %2250  ;;  %1520 = vperm.xlu1 (!%p1824_p3), %2247, %v2249_v44  }
 0x366   : > { %v1415_v6 = vadd.f32 %v1950_v60, %v1222_v59  ;;  %v1951_v9 = vpop.f32.mrb[16].mxu1  ;;  %2262 = vrcp.f32 (!%p1824_p3), %v1482_v5  ;;  %v1485_v59 = vld [vmem:[#allocation3 + $0x48] sm:$0xff] (!%p1824_p3)  ;;  %1510 = vperm.xlu0 (!%p1824_p3), %2246, %v2251_v10  }
 0x367   : > { %v1952_v20 = vpop.f32.mrb[17].mxu1  ;;  %2264 = vrcp.f32 (!%p1824_p3), %v1485_v59 }
 0x368   : > { %1431 = vst [vmem:[#allocation4 + $0x38] sm:$0xff] %v1415_v6  ;;  %v1953_v14 = vadd.f32 %v1952_v20, %v1951_v9  ;;  %2266 = vrcp.f32 (!%p1824_p3), %v1484_v45  ;;  %v1487_v9 = vld [vmem:[#allocation3 + $0x58] sm:$0xff] (!%p1824_p3) }
 0x369   : > { %2268 = vrcp.f32 (!%p1824_p3), %v1487_v9 }
 0x36a   : > { %v1416_v3 = vadd.f32 %v1953_v14, %v1223_v0  ;;  %v1954_v17 = vpop.f32.mrb[18].mxu1  ;;  %v1486_v0 = vld [vmem:[#allocation3 + $0x50] sm:$0xff] (!%p1824_p3) }
 0x36b   : > { %v1955_v22 = vpop.f32.mrb[19].mxu1  ;;  %v2253_v60 = vpop.eup (!%p1824_p3), %2252  ;;  %2270 = vrcp.f32 (!%p1824_p3), %v1486_v0 }
 0x36c   : > { %1432 = vst [vmem:[#allocation4 + $0x40] sm:$0xff] %v1416_v3  ;;  %v1956_v13 = vadd.f32 %v1955_v22, %v1954_v17  ;;  %v2255_v6 = vpop.eup (!%p1824_p3), %2254  ;;  %1525 = vperm.xlu1 (!%p1824_p3), %2247, %v2253_v60   ;;  %v1488_v17 = vld [vmem:[#allocation3 + $0x60] sm:$0xff] (!%p1824_p3)  ;;  %2272 = vrcp.f32 (!%p1824_p3), %v1489_v11 }
 0x36d   : > { %v2257_v20 = vpop.eup (!%p1824_p3), %2256  ;;  %1515 = vperm.xlu0 (!%p1824_p3), %2246, %v2255_v6   ;;  %2274 = vrcp.f32 (!%p1824_p3), %v1488_v17 }
 0x36e   : > { %v1417_v53 = vadd.f32 %v1956_v13, %v1224_v46  ;;  %v1957_v23 = vpop.f32.mrb[20].mxu1  ;;  %v2259_v14 = vpop.eup (!%p1824_p3), %2258  ;;  %v1491_v46 = vld [vmem:[#allocation3 + $0x78] sm:$0xff] (!%p1824_p3) }
 0x36f   : > { %v1958_v63 = vpop.f32.mrb[21].mxu1  ;;  %v2261_v3 = vpop.eup (!%p1824_p3), %2260  ;;  %2276 = vrcp.f32 (!%p1824_p3), %v1491_v46 }
 0x370   : > { %1433 = vst [vmem:[#allocation4 + $0x48] sm:$0xff] %v1417_v53  ;;  %v1959_v35 = vadd.f32 %v1958_v63, %v1957_v23  ;;  %1535 = vperm.xlu1 (!%p1824_p3), %2247, %v2257_v20   ;;  %v2263_v22 = vpop.eup (!%p1824_p3), %2262  ;;  %2278 = vrcp.f32 (!%p1824_p3), %v1490_v62 }
 0x371   : > { %1530 = vperm.xlu0 (!%p1824_p3), %2246, %v2259_v14   ;;  %v2265_v13 = vpop.eup (!%p1824_p3), %2264 }
 0x372   : > { %v1418_v54 = vadd.f32 %v1959_v35, %v1225_v33  ;;  %v1960_v47 = vpop.f32.mrb[22].mxu1  ;;  %v2267_v53 = vpop.eup (!%p1824_p3), %2266 }
 0x373   : > { %v1961_v48 = vpop.f32.mrb[23].mxu1  ;;  %v2269_v23 = vpop.eup (!%p1824_p3), %2268 }
 0x374   : > { %1434 = vst [vmem:[#allocation4 + $0x50] sm:$0xff] %v1418_v54  ;;  %v1962_v36 = vadd.f32 %v1961_v48, %v1960_v47  ;;  %1545 = vperm.xlu1 (!%p1824_p3), %2247, %v2261_v3   ;;  %v1462_v47 = vld [vmem:[#allocation4 + $0x10] sm:$0xff] (!%p1824_p3)  ;;  %v1460_v48 = vld [vmem:[#allocation4] sm:$0xff] (!%p1824_p3) }
 0x375   : > { %1540 = vperm.xlu0 (!%p1824_p3), %2246, %v2263_v22   ;;  %v2271_v63 = vpop.eup (!%p1824_p3), %2270 }
 0x376   : > { %v1419_v28 = vadd.f32 %v1962_v36, %v1226_v37  ;;  %v1963_v18 = vpop.f32.mrb[24].mxu1  ;;  %v2273_v33 = vpop.eup (!%p1824_p3), %2272 }
 0x377   : > { %v1964_v1 = vpop.f32.mrb[25].mxu1  ;;  %v2275_v35 = vpop.eup (!%p1824_p3), %2274  ;;  %v1469_v41 = vld [vmem:[#allocation4 + $0x48] sm:$0xff] (!%p1824_p3) }
 0x378   : > { %1435 = vst [vmem:[#allocation4 + $0x58] sm:$0xff] %v1419_v28  ;;  %v1965_v2 = vadd.f32 %v1964_v1, %v1963_v18  ;;  %1555 = vperm.xlu1 (!%p1824_p3), %2247, %v2265_v13   ;;  %v1463_v18 = vld [vmem:[#allocation4 + $0x18] sm:$0xff] (!%p1824_p3)  ;;  %v1461_v1 = vld [vmem:[#allocation4 + $0x8] sm:$0xff] (!%p1824_p3) }
 0x379   : > { %1550 = vperm.xlu0 (!%p1824_p3), %2246, %v2267_v53   ;;  %v2277_v39 = vpop.eup (!%p1824_p3), %2276 }
 0x37a   : > { %v1420_v29 = vadd.f32 %v1965_v2, %v1227_v40  ;;  %v1966_v30 = vpop.f32.mrb[26].mxu1  ;;  %v2279_v54 = vpop.eup (!%p1824_p3), %2278 }
 0x37b   : > { %v1967_v21 = vpop.f32.mrb[27].mxu1  ;;  %v1470_v56 = vld [vmem:[#allocation4 + $0x50] sm:$0xff] (!%p1824_p3) }
 0x37c   : > { %1436 = vst [vmem:[#allocation4 + $0x60] sm:$0xff] %v1420_v29  ;;  %v1968_v34 = vadd.f32 %v1967_v21, %v1966_v30  ;;  %1565 = vperm.xlu1 (!%p1824_p3), %2247, %v2269_v23   ;;  %v1465_v30 = vld [vmem:[#allocation4 + $0x28] sm:$0xff] (!%p1824_p3)  ;;  %v1464_v21 = vld [vmem:[#allocation4 + $0x20] sm:$0xff] (!%p1824_p3) }
 0x37d   : > { %1560 = vperm.xlu0 (!%p1824_p3), %2246, %v2271_v63  }
 0x37e   : > { %v1421_v50 = vadd.f32 %v1968_v34, %v1228_v15  ;;  %v1969_v52 = vpop.f32.mrb[28].mxu1 }
 0x37f   : > { %v1970_v24 = vpop.f32.mrb[29].mxu1 }
 0x380   : > { %1437 = vst [vmem:[#allocation4 + $0x68] sm:$0xff] %v1421_v50  ;;  %v1971_v26 = vadd.f32 %v1970_v24, %v1969_v52  ;;  %1575 = vperm.xlu1 (!%p1824_p3), %2247, %v2273_v33   ;;  %v1467_v50 = vld [vmem:[#allocation4 + $0x38] sm:$0xff] (!%p1824_p3)  ;;  %v1466_v52 = vld [vmem:[#allocation4 + $0x30] sm:$0xff] (!%p1824_p3) }
 0x381   : > { %1570 = vperm.xlu0 (!%p1824_p3), %2246, %v2275_v35  }
 0x382   : > { %v1422_v61 = vadd.f32 %v1971_v26, %v1229_v51  ;;  %v1972_v16 = vpop.f32.mrb[30].mxu1  ;;  %1459 = sbr.rel (%p1824_p3) target bundleno = 1032 (0x408), region = 40 }
 0x383   : > { %v1973_v42 = vpop.f32.mrb[31].mxu1  ;;  %v1472_v7 = vld [vmem:[#allocation4 + $0x60] sm:$0xff] (!%p1824_p3) }
 0x384   : > { %1438 = vst [vmem:[#allocation4 + $0x70] sm:$0xff] %v1422_v61  ;;  %v1974_v57 = vadd.f32 %v1973_v42, %v1972_v16  ;;  %1585 = vperm.xlu1 (!%p1824_p3), %2247, %v2277_v39   ;;  %v1468_v61 = vld [vmem:[#allocation4 + $0x40] sm:$0xff] (!%p1824_p3) }
 0x385   : > { %1580 = vperm.xlu0 (!%p1824_p3), %2246, %v2279_v54  }
 0x386   : > { %v1423_v43 = vadd.f32 %v1974_v57, %v1230_v58 }
 0x387   : > { %v1473_v32 = vld [vmem:[#allocation4 + $0x68] sm:$0xff] (!%p1824_p3) }
 0x388   : > { %1439 = vst [vmem:[#allocation4 + $0x78] sm:$0xff] %v1423_v43  ;;  %v1471_v43 = vld [vmem:[#allocation4 + $0x58] sm:$0xff] (!%p1824_p3) }
 0x38b   : > { %v1474_v60 = vld [vmem:[#allocation4 + $0x70] sm:$0xff] }
 0x38f   : > { %v1475_v59 = vld [vmem:[#allocation4 + $0x78] sm:$0xff] }
 0x3e4   : > { %v1521_v37 = vpop.permute.xlu1 %1520 }
 0x3e5   : > { %v1590_v36 = vmul.f32 %v1521_v37, %v1462_v47  ;;  %v1511_v12 = vpop.permute.xlu0 %1510 }
 0x3e6   : > { %v1588_v28 = vmul.f32 %v1511_v12, %v1460_v48 }
 0x3e7   : > { %1606 = vst [vmem:[%s2530_s22 + $0x10] sm:$0xff] %v1590_v36 }
 0x3e8   : > { %1604 = vst [vmem:[%s2530_s22] sm:$0xff] %v1588_v28 }
 0x3eb   : > { %v1526_v40 = vpop.permute.xlu1 %1525 }
 0x3ec   : > { %v1591_v2 = vmul.f32 %v1526_v40, %v1463_v18  ;;  %v1516_v27 = vpop.permute.xlu0 %1515 }
 0x3ed   : > { %v1589_v29 = vmul.f32 %v1516_v27, %v1461_v1 }
 0x3ee   : > { %1607 = vst [vmem:[%s2530_s22 + $0x18] sm:$0xff] %v1591_v2 }
 0x3ef   : > { %1605 = vst [vmem:[%s2530_s22 + $0x8] sm:$0xff] %v1589_v29  ;;  %v1536_v15 = vpop.permute.xlu1 %1535 }
 0x3f0   : > { %v1593_v34 = vmul.f32 %v1536_v15, %v1465_v30  ;;  %v1531_v25 = vpop.permute.xlu0 %1530 }
 0x3f1   : > { %v1592_v55 = vmul.f32 %v1531_v25, %v1464_v21 }
 0x3f2   : > { %1609 = vst [vmem:[%s2530_s22 + $0x28] sm:$0xff] %v1593_v34 }
 0x3f3   : > { %1608 = vst [vmem:[%s2530_s22 + $0x20] sm:$0xff] %v1592_v55  ;;  %v1546_v24 = vpop.permute.xlu1 %1545 }
 0x3f4   : > { %v1595_v51 = vmul.f32 %v1546_v24, %v1467_v50  ;;  %v1541_v26 = vpop.permute.xlu0 %1540 }
 0x3f5   : > { %v1594_v38 = vmul.f32 %v1541_v26, %v1466_v52 }
 0x3f6   : > { %1611 = vst [vmem:[%s2530_s22 + $0x38] sm:$0xff] %v1595_v51 }
 0x3f7   : > { %1610 = vst [vmem:[%s2530_s22 + $0x30] sm:$0xff] %v1594_v38  ;;  %v1556_v16 = vpop.permute.xlu1 %1555 }
 0x3f8   : > { %v1597_v42 = vmul.f32 %v1556_v16, %v1469_v41  ;;  %v1551_v58 = vpop.permute.xlu0 %1550 }
 0x3f9   : > { %v1596_v57 = vmul.f32 %v1551_v58, %v1468_v61 }
 0x3fa   : > { %1613 = vst [vmem:[%s2530_s22 + $0x48] sm:$0xff] %v1597_v42 }
 0x3fb   : > { %1612 = vst [vmem:[%s2530_s22 + $0x40] sm:$0xff] %v1596_v57  ;;  %v1566_v4 = vpop.permute.xlu1 %1565 }
 0x3fc   : > { %v1599_v49 = vmul.f32 %v1566_v4, %v1471_v43  ;;  %v1561_v8 = vpop.permute.xlu0 %1560 }
 0x3fd   : > { %v1598_v31 = vmul.f32 %v1561_v8, %v1470_v56 }
 0x3fe   : > { %1615 = vst [vmem:[%s2530_s22 + $0x58] sm:$0xff] %v1599_v49 }
 0x3ff   : > { %1614 = vst [vmem:[%s2530_s22 + $0x50] sm:$0xff] %v1598_v31  ;;  %v1576_v19 = vpop.permute.xlu1 %1575 }
 0x400   : > { %v1601_v5 = vmul.f32 %v1576_v19, %v1473_v32  ;;  %v1571_v44 = vpop.permute.xlu0 %1570 }
 0x401   : > { %v1600_v10 = vmul.f32 %v1571_v44, %v1472_v7 }
 0x402   : > { %1617 = vst [vmem:[%s2530_s22 + $0x68] sm:$0xff] %v1601_v5 }
 0x403   : > { %1616 = vst [vmem:[%s2530_s22 + $0x60] sm:$0xff] %v1600_v10  ;;  %v1586_v45 = vpop.permute.xlu1 %1585 }
 0x404   : > { %v1603_v6 = vmul.f32 %v1586_v45, %v1475_v59  ;;  %v1581_v9 = vpop.permute.xlu0 %1580 }
 0x405   : > { %v1602_v20 = vmul.f32 %v1581_v9, %v1474_v60 }
 0x406   : > { %1619 = vst [vmem:[%s2530_s22 + $0x78] sm:$0xff] %v1603_v6 }
 0x407   : > { %1618 = vst [vmem:[%s2530_s22 + $0x70] sm:$0xff] %v1602_v20 }
 0x408 PF: > { %s1827_s15 = sshll.u32 %s2374_s17, 5  ;;  %s1636_s19 = sshll.u32 %s2530_s22, 4  ;;  %s3141_s19 = int_to_ptr.vmem [resolvable:$true] %s1636_s19 }
 0x409   : > { %s1633_s18 = sadd.s32 %s1827_s15, %s2506_s8  ;;  %s3230_s6 = sand.u32 1, %s2358_s13  }
 0x40a   : > { %s1828_s20 = sshll.u32 %s1633_s18, 7  ;;  %s3150_s7 = scalar_lea.sflag [#allocation6], %s3230_s6 }
 0x40b   : > { %s3146_s26 = scalar_lea.hbm %s3211_s3, %s1828_s20  ;;  %s2280_s9 = scalar_lea.vmem %s3141_s19, 2048 }
 0x40c   : > { %p2281_p4 = scmp.ne.s32.totalorder %s3141_s19, %s2280_s9  ;;  %s2396_s17 = smov [#allocation5]  }
 0x40d   : > { %s2284_s8 = sshll.u32 %s2396_s17, 4  ;;  %s2285_s8 = int_to_ptr.vmem [resolvable:$false] %s2284_s8 }
 0x40e   : > { %p2282_p5 = pnand %p2281_p4, %p2481_p6  ;;  %s2286_s10 = scalar_lea.vmem %s2285_s8, 4096 }
 0x40f   : > { %p2287_p9 = scmp.lt.s32.totalorder %s3141_s19, %s2285_s8  ;;  %p2288_p10 = scmp.lt.s32.totalorder %s2286_s10, %s2280_s9 }
 0x410   : > { %p2283_p8 = pneg %p2282_p5 }
 0x411   : > { %p2289_p11 = por %p2288_p10, %p2287_p9 }
 0x413   : > { %p2290_p12 = pnand %p2289_p11, %p2283_p8 }
 0x415   : > { %2293 = shalt.err (!%p2290_p12)
}
 0x416   : > { %s2294_s23 = scalar_lea.hbm %s3146_s26, 2048  ;;  %s2298_s4 = scalar_lea.hbm %s3211_s3, 8192 }
 0x417   : > { %p2295_p13 = scmp.ne.s32.totalorder %s3146_s26, %s2294_s23  ;;  %p2299_p2 = scmp.lt.u32.totalorder %s3146_s26, %s3211_s3 }
 0x418   : > { %p2300_p3 = scmp.lt.u32.totalorder %s2298_s4, %s2294_s23  ;;  %p2302_p5 = scmp.lt.u32.totalorder %s2294_s23, %s3146_s26 }
 0x419   : > { %p2296_p0 = pnand %p2295_p13, %p2481_p6 }
 0x41a   : > { %p2301_p4 = por %p2300_p3, %p2299_p2 }
 0x41b   : > { %p2297_p1 = pneg %p2296_p0 }
 0x41c   : > { %p2303_p8 = por %p2302_p5, %p2301_p4 }
 0x41e   : > { %p2304_p9 = pnand %p2303_p8, %p2297_p1 }
 0x420   : > { %2307 = shalt.err (!%p2304_p9)
}
 0x421   : > { %s2397_s11 = smov 128   ;;  %s2398_s22 = smov 8  }
 0x422   : > { %2055 = dma.vmem_to_hbm [thread:$0]  (%p2481_p6), %s3141_s19, 2048, %s3146_s26, %s3150_s7, %s2397_s11, %s2397_s11, %s2398_s22  }
 0x423 PF: > { %p2061_p10 = scmp.ge.s32.totalorder %s2390_s21, 2  ;;  %s1651_s15 = sand.u32 1, %s2354_s12  }
 0x424   : > { %s1652_s18 = scalar_lea.sflag [#allocation6], %s1651_s15 }
 0x425   : > { %p2058_p11 = pnand %p2061_p10, %p2488_p7 }
 0x427   : > { %2349 = dma.done.wait (!%p2058_p11), %s1652_s18, 2048  }
 0x428   : > { %2351 = vsyncadd (!%p2058_p11), %s1652_s18, 4294965248  ;;  %s16_s21 = sadd.s32 1, %s2390_s21   ;;  %s3231_s20 = sld [smem:[#allocation14_spill]] }
 0x429   : > { %p13_p12 = scmp.ge.s32.totalorder %s16_s21, 10   ;;  %s3232_s15 = sld [smem:[#allocation8_spill]] }
 0x42a   : > { %s3233_s16 = sld [smem:[#allocation9_spill]]  ;;  %s3234_s17 = sld [smem:[#allocation10_spill]] }
 0x42b   : > { %s3235_s18 = sld [smem:[#allocation11_spill]]  ;;  %s3236_s19 = sld [smem:[#allocation12_spill]] }
 0x42c   : > { %s3237_s27 = sld [smem:[#allocation13_spill]]  ;;  %s3238_s12 = smov %s2358_s13 }
 0x42d   : > { %s3239_s13 = smov %s2362_s14  ;;  %15 = sbr.rel (!%p13_p12) target bundleno = 6 (0x6), region = 81 }
 0x42e   : > { %s3240_s14 = smov %s3231_s20 }
 0x432   : > { %s3241_s20 = smov %s3237_s27 }
 0x434   :  { %1657 = vsyncpa [#allocation6], 1 }
 0x435   :  { %1659 = vsyncpa [#allocation6 + $0x1], 1 }

</bundles_post_ra>
